<compile_context>
chip_gen: v7x
topology: tpu7x:2x2x1
jax: 0.10.0
libtpu: 0.0.40
codegen_flags: <defaults>
</compile_context>

<pallas_src>
import math
from functools import partial

import jax
import jax.numpy as jnp
from jax.experimental import pallas as pl
from jax.experimental.pallas import tpu as pltpu


# ----------------------------- Pallas kernels ------------------------------

def _attn_block_kernel(x_ref, kv_ref, mask_ref,
                       wq_ref, bq_ref, wk_ref, bk_ref, wv_ref, bv_ref,
                       wo_ref, bo_ref, g_ref, beta_ref,
                       o_ref, w_ref, *, num_heads):
    """One batch element: full multi-head attention fused with the residual
    add + LayerNorm epilogue.  1/sqrt(head_dim) scaling is folded into wq/bq.
    Weights arrive pre-split per head: wq/wk/wv [H, D, hd], wo [H, hd, D]."""
    x = x_ref[0]          # (S, D)     query source == residual
    kvx = kv_ref[0]       # (S_kv, D)  key/value source

    # Additive key-padding mask built in-kernel from the raw int mask.
    neg_inf = jnp.finfo(jnp.float32).min
    add_mask = jnp.where(mask_ref[0] == 0, neg_inf, 0.0)        # (1, S_kv)

    acc = None
    for h in range(num_heads):                                   # static unroll
        q = jnp.dot(x, wq_ref[h], preferred_element_type=jnp.float32) + bq_ref[h]
        k = jnp.dot(kvx, wk_ref[h], preferred_element_type=jnp.float32) + bk_ref[h]
        v = jnp.dot(kvx, wv_ref[h], preferred_element_type=jnp.float32) + bv_ref[h]

        # scores = q @ k^T : contract last dims directly (no explicit transpose)
        scores = jax.lax.dot_general(q, k, (((1,), (1,)), ((), ())),
                                     preferred_element_type=jnp.float32)
        scores = scores + add_mask
        scores = scores - jnp.max(scores, axis=-1, keepdims=True)
        e = jnp.exp(scores)
        p = e * pl.reciprocal(jnp.sum(e, axis=-1, keepdims=True), approx=True)
        w_ref[0, h] = p                                           # (S, S_kv)

        o_h = jnp.dot(p, v, preferred_element_type=jnp.float32)            # (S, hd)
        contrib = jnp.dot(o_h, wo_ref[h], preferred_element_type=jnp.float32)  # (S, D)
        acc = contrib if acc is None else acc + contrib

    hidden = acc + bo_ref[...] + x            # out-proj bias + residual
    mean = jnp.mean(hidden, axis=-1, keepdims=True)
    var = jnp.mean(jnp.square(hidden - mean), axis=-1, keepdims=True)
    o_ref[0] = (hidden - mean) * jax.lax.rsqrt(var + 1e-5) * g_ref[...] + beta_ref[...]


def _ffn_ln_kernel(x_ref, w1_ref, b1_ref, w2_ref, b2_ref, g_ref, beta_ref, o_ref):
    """LayerNorm(relu(x @ w1 + b1) @ w2 + b2 + x) — PoswiseFeedForwardNet
    (1x1 convs == matmuls over the feature dim) fused with the final LN."""
    x = x_ref[...]
    h = jnp.maximum(
        jnp.dot(x, w1_ref[...], preferred_element_type=jnp.float32) + b1_ref[...],
        0.0)
    f = jnp.dot(h, w2_ref[...], preferred_element_type=jnp.float32) + b2_ref[...] + x
    mean = jnp.mean(f, axis=-1, keepdims=True)
    var = jnp.mean(jnp.square(f - mean), axis=-1, keepdims=True)
    o_ref[...] = (f - mean) * jax.lax.rsqrt(var + 1e-5) * g_ref[...] + beta_ref[...]


# ----------------------------- kernel wrappers ------------------------------

def fused_attention_block(hidden, kv, key_mask, p, ln_g, ln_b, num_heads):
    """Multi-head attention + residual + LayerNorm in a single pallas_call.

    hidden: [B, S, D] (queries + residual), kv: [B, S_kv, D],
    key_mask: [B, S_kv] int (1 = attend, 0 = masked).
    Returns (LayerNorm(hidden + MHA(hidden, kv)), attn_weights [B, H, S, S_kv]).
    """
    B, S, D = hidden.shape
    S_kv = kv.shape[1]
    H = num_heads
    hd = D // H
    scaling = hd ** -0.5

    # One-time weight-side head split (free layout plumbing, no per-token cost).
    wq_h = (p["wq"] * scaling).reshape(D, H, hd).transpose(1, 0, 2)   # (H, D, hd)
    bq_h = (p["bq"] * scaling).reshape(H, 1, hd)
    wk_h = p["wk"].reshape(D, H, hd).transpose(1, 0, 2)
    bk_h = p["bk"].reshape(H, 1, hd)
    wv_h = p["wv"].reshape(D, H, hd).transpose(1, 0, 2)
    bv_h = p["bv"].reshape(H, 1, hd)
    wo_h = p["wo"].reshape(H, hd, D)                                   # rows by head
    bo = p["bo"].reshape(1, D)
    gamma = ln_g.reshape(1, D)
    beta = ln_b.reshape(1, D)
    mask3 = key_mask.astype(jnp.int32).reshape(B, 1, S_kv)

    def full(*shape):
        return pl.BlockSpec(shape, lambda i, _s=len(shape): (0,) * _s)

    out, w = pl.pallas_call(
        partial(_attn_block_kernel, num_heads=H),
        grid=(B,),
        out_shape=(
            jax.ShapeDtypeStruct((B, S, D), jnp.float32),
            jax.ShapeDtypeStruct((B, H, S, S_kv), jnp.float32),
        ),
        in_specs=[
            pl.BlockSpec((1, S, D), lambda i: (i, 0, 0)),       # hidden
            pl.BlockSpec((1, S_kv, D), lambda i: (i, 0, 0)),    # kv source
            pl.BlockSpec((1, 1, S_kv), lambda i: (i, 0, 0)),    # raw int key mask
            full(H, D, hd), full(H, 1, hd),                     # wq, bq (scaled)
            full(H, D, hd), full(H, 1, hd),                     # wk, bk
            full(H, D, hd), full(H, 1, hd),                     # wv, bv
            full(H, hd, D), full(1, D),                         # wo, bo
            full(1, D), full(1, D),                             # LN gamma, beta
        ],
        out_specs=(
            pl.BlockSpec((1, S, D), lambda i: (i, 0, 0)),
            pl.BlockSpec((1, H, S, S_kv), lambda i: (i, 0, 0, 0)),
        ),
        compiler_params=pltpu.CompilerParams(dimension_semantics=("parallel",)),
    )(hidden, kv, mask3, wq_h, bq_h, wk_h, bk_h, wv_h, bv_h, wo_h, bo, gamma, beta)
    return out, w


def _row_tile(m, target=512):
    """Largest row tile <= target that divides m and is a multiple of 8."""
    tm = math.gcd(m, target)
    return tm if tm % 8 == 0 else m


def ffn_layernorm(x, w1, b1, w2, b2, ln_g, ln_b):
    """Fused FFN (with internal residual) + final LayerNorm, row-tiled over M."""
    M, D = x.shape
    F = w1.shape[1]
    TM = _row_tile(M)
    return pl.pallas_call(
        _ffn_ln_kernel,
        grid=(M // TM,),
        out_shape=jax.ShapeDtypeStruct((M, D), jnp.float32),
        in_specs=[
            pl.BlockSpec((TM, D), lambda i: (i, 0)),
            pl.BlockSpec((D, F), lambda i: (0, 0)),
            pl.BlockSpec((1, F), lambda i: (0, 0)),
            pl.BlockSpec((F, D), lambda i: (0, 0)),
            pl.BlockSpec((1, D), lambda i: (0, 0)),
            pl.BlockSpec((1, D), lambda i: (0, 0)),
            pl.BlockSpec((1, D), lambda i: (0, 0)),
        ],
        out_specs=pl.BlockSpec((TM, D), lambda i: (i, 0)),
        compiler_params=pltpu.CompilerParams(dimension_semantics=("parallel",)),
    )(x, w1, b1.reshape(1, F), w2, b2.reshape(1, D),
      ln_g.reshape(1, D), ln_b.reshape(1, D))


# ------------------------------ forward pass --------------------------------

def decoder_forward(params, input_ids, attention_mask,
                    encoder_hidden_states, encoder_attention_mask, num_heads):
    B, S = input_ids.shape
    D = params["emb"].shape[1]

    # embedding gather + sinusoidal positional encoding (plain-JAX glue)
    x = params["emb"][input_ids] + params["pe"][:S][None, :, :]

    # ---- DecoderLayer (3 fused pallas_calls total) ----
    # self attention + residual + LayerNorm
    h, self_w = fused_attention_block(
        x, x, attention_mask, params["self_attn"],
        params["ln_self_g"], params["ln_self_b"], num_heads)
    # cross attention + residual + LayerNorm
    h, cross_w = fused_attention_block(
        h, encoder_hidden_states, encoder_attention_mask, params["cross_attn"],
        params["ln_cross_g"], params["ln_cross_b"], num_heads)
    # position-wise FFN (residual inside) + final LayerNorm
    out = ffn_layernorm(h.reshape(B * S, D),
                        params["w1"], params["b1"], params["w2"], params["b2"],
                        params["ln_final_g"], params["ln_final_b"]).reshape(B, S, D)
    return out, (self_w, cross_w)


# --------------------------- parameter init --------------------------------

def init_params(key, vocab_size, d_model, ff, max_len, pad_id):
    ks = jax.random.split(key, 16)

    def W(k, shape):
        return jax.random.normal(k, shape, jnp.float32) * 0.02

    def attn_params(kq, kk, kv, ko):
        return {
            "wq": W(kq, (d_model, d_model)), "bq": W(jax.random.fold_in(kq, 1), (d_model,)),
            "wk": W(kk, (d_model, d_model)), "bk": W(jax.random.fold_in(kk, 1), (d_model,)),
            "wv": W(kv, (d_model, d_model)), "bv": W(jax.random.fold_in(kv, 1), (d_model,)),
            "wo": W(ko, (d_model, d_model)), "bo": W(jax.random.fold_in(ko, 1), (d_model,)),
        }

    emb = W(ks[0], (vocab_size, d_model)).at[pad_id].set(0.0)  # padding_idx row

    # sinusoidal positional encoding (PositionalEncoding buffer)
    position = jnp.arange(max_len, dtype=jnp.float32)[:, None]
    div_term = jnp.exp(jnp.arange(0, d_model, 2, dtype=jnp.float32)
                       * -(math.log(10000.0) / d_model))
    pe = jnp.zeros((max_len, d_model), jnp.float32)
    pe = pe.at[:, 0::2].set(jnp.sin(position * div_term))
    pe = pe.at[:, 1::2].set(jnp.cos(position * div_term))

    return {
        "emb": emb, "pe": pe,
        "self_attn": attn_params(ks[1], ks[2], ks[3], ks[4]),
        "cross_attn": attn_params(ks[5], ks[6], ks[7], ks[8]),
        "ln_self_g": jnp.ones((d_model,), jnp.float32),
        "ln_self_b": jnp.zeros((d_model,), jnp.float32),
        "ln_cross_g": jnp.ones((d_model,), jnp.float32),
        "ln_cross_b": jnp.zeros((d_model,), jnp.float32),
        "ln_final_g": jnp.ones((d_model,), jnp.float32),
        "ln_final_b": jnp.zeros((d_model,), jnp.float32),
        "w1": W(ks[9], (d_model, ff)), "b1": W(ks[10], (ff,)),        # conv1 (1x1)
        "w2": W(ks[11], (ff, d_model)), "b2": W(ks[12], (d_model,)),  # conv2 (1x1)
    }


# ------------------------- pure-JAX reference ------------------------------

def expand_mask(mask, tgt_len, dtype=jnp.float32):
    """[B, src] -> [B, 1, tgt, src]; 0 where attend, finfo.min where masked."""
    B, src = mask.shape
    m = jnp.broadcast_to(mask.astype(dtype)[:, None, None, :], (B, 1, tgt_len, src))
    inv = 1.0 - m
    return jnp.where(inv.astype(bool), jnp.finfo(dtype).min, inv)


def ref_forward(params, input_ids, attention_mask, enc_hidden, enc_mask, num_heads):
    hp = jax.lax.Precision.HIGHEST
    B, S = input_ids.shape
    D = params["emb"].shape[1]
    hd = D // num_heads

    def lin(x, w, b):
        return jnp.dot(x, w, precision=hp) + b

    def ln(x, g, b):
        m = x.mean(-1, keepdims=True)
        v = jnp.mean((x - m) ** 2, axis=-1, keepdims=True)
        return (x - m) / jnp.sqrt(v + 1e-5) * g + b

    def attn(h, kv, mask, p):
        Bq, Sq, _ = h.shape
        Skv = kv.shape[1]
        q = lin(h, p["wq"], p["bq"]) * hd ** -0.5
        k = lin(kv, p["wk"], p["bk"])
        v = lin(kv, p["wv"], p["bv"])
        q = q.reshape(Bq, Sq, num_heads, hd).transpose(0, 2, 1, 3)
        k = k.reshape(Bq, Skv, num_heads, hd).transpose(0, 2, 1, 3)
        v = v.reshape(Bq, Skv, num_heads, hd).transpose(0, 2, 1, 3)
        s = jnp.einsum("bhqd,bhkd->bhqk", q, k, precision=hp) + mask
        w = jax.nn.softmax(s, axis=-1)
        o = jnp.einsum("bhqk,bhkd->bhqd", w, v, precision=hp)
        o = o.transpose(0, 2, 1, 3).reshape(Bq, Sq, D)
        return lin(o, p["wo"], p["bo"]), w

    x = params["emb"][input_ids] + params["pe"][:S][None]
    sm = expand_mask(attention_mask, S)
    cm = expand_mask(enc_mask, S)
    a, sw = attn(x, x, sm, params["self_attn"])
    h = ln(x + a, params["ln_self_g"], params["ln_self_b"])
    a, cw = attn(h, enc_hidden, cm, params["cross_attn"])
    h = ln(h + a, params["ln_cross_g"], params["ln_cross_b"])
    f = lin(jnp.maximum(lin(h, params["w1"], params["b1"]), 0.0),
            params["w2"], params["b2"]) + h
    h = ln(f, params["ln_final_g"], params["ln_final_b"])
    return h, (sw, cw)


# --------------------------------- main -------------------------------------

if __name__ == "__main__":
    B, S, S_enc = 2, 8, 12
    d_model, n_heads, ff_dim = 32, 4, 64
    vocab, max_len, pad_id = 50, 16, 0

    key = jax.random.PRNGKey(0)
    k_ids, k_enc, k_par = jax.random.split(key, 3)

    input_ids = jax.random.randint(k_ids, (B, S), 1, vocab)
    attention_mask = jnp.ones((B, S), jnp.int32).at[1, 6:].set(0)
    encoder_hidden_states = jax.random.normal(k_enc, (B, S_enc, d_model), jnp.float32)
    encoder_attention_mask = jnp.ones((B, S_enc), jnp.int32).at[0, 10:].set(0)

    params = init_params(k_par, vocab, d_model, ff_dim, max_len, pad_id)

    out, (self_w, cross_w) = decoder_forward(
        params, input_ids, attention_mask,
        encoder_hidden_states, encoder_attention_mask, n_heads)
    jax.block_until_ready(out)

    # sanity check against a pure-JAX reference
    ref_out, (ref_sw, ref_cw) = ref_forward(
        params, input_ids, attention_mask,
        encoder_hidden_states, encoder_attention_mask, n_heads)
    assert out.shape == (B, S, d_model)
    assert self_w.shape == (B, n_heads, S, S)
    assert cross_w.shape == (B, n_heads, S, S_enc)
    assert jnp.allclose(out, ref_out, atol=2e-2, rtol=2e-2)
    assert jnp.allclose(self_w, ref_sw, atol=2e-2, rtol=2e-2)
    assert jnp.allclose(cross_w, ref_cw, atol=2e-2, rtol=2e-2)

    print("KERNEL_OK")
</pallas_src>

<mosaic_0001>
module attributes {stable_mosaic.version = 11 : i64} {
  func.func @_attn_block_kernel(%arg0: i32, %arg1: memref<1x8x32xf32, #tpu.memory_space<vmem>>, %arg2: memref<1x8x32xf32, #tpu.memory_space<vmem>>, %arg3: memref<1x1x8xi32, #tpu.memory_space<vmem>>, %arg4: memref<4x32x8xf32, #tpu.memory_space<vmem>>, %arg5: memref<4x1x8xf32, #tpu.memory_space<vmem>>, %arg6: memref<4x32x8xf32, #tpu.memory_space<vmem>>, %arg7: memref<4x1x8xf32, #tpu.memory_space<vmem>>, %arg8: memref<4x32x8xf32, #tpu.memory_space<vmem>>, %arg9: memref<4x1x8xf32, #tpu.memory_space<vmem>>, %arg10: memref<4x8x32xf32, #tpu.memory_space<vmem>>, %arg11: memref<1x32xf32, #tpu.memory_space<vmem>>, %arg12: memref<1x32xf32, #tpu.memory_space<vmem>>, %arg13: memref<1x32xf32, #tpu.memory_space<vmem>>, %arg14: memref<1x8x32xf32, #tpu.memory_space<vmem>>, %arg15: memref<1x4x8x8xf32, #tpu.memory_space<vmem>>) attributes {dimension_semantics = [#tpu.dimension_semantics<parallel>], iteration_bounds = array<i64: 2>, scalar_prefetch = 0 : i64, scratch_operands = 0 : i64, tpu.core_type = #tpu.core_type<tc>, window_params = [{transform_indices = @transform_0, window_bounds = array<i64: 1, 8, 32>}, {transform_indices = @transform_1, window_bounds = array<i64: 1, 8, 32>}, {transform_indices = @transform_2, window_bounds = array<i64: 1, 1, 8>}, {pipeline_mode = #tpu.pipeline_mode<synchronous>, transform_indices = @transform_3, window_bounds = array<i64: 4, 32, 8>}, {pipeline_mode = #tpu.pipeline_mode<synchronous>, transform_indices = @transform_4, window_bounds = array<i64: 4, 1, 8>}, {pipeline_mode = #tpu.pipeline_mode<synchronous>, transform_indices = @transform_5, window_bounds = array<i64: 4, 32, 8>}, {pipeline_mode = #tpu.pipeline_mode<synchronous>, transform_indices = @transform_6, window_bounds = array<i64: 4, 1, 8>}, {pipeline_mode = #tpu.pipeline_mode<synchronous>, transform_indices = @transform_7, window_bounds = array<i64: 4, 32, 8>}, {pipeline_mode = #tpu.pipeline_mode<synchronous>, transform_indices = @transform_8, window_bounds = array<i64: 4, 1, 8>}, {pipeline_mode = #tpu.pipeline_mode<synchronous>, transform_indices = @transform_9, window_bounds = array<i64: 4, 8, 32>}, {pipeline_mode = #tpu.pipeline_mode<synchronous>, transform_indices = @transform_10, window_bounds = array<i64: 1, 32>}, {pipeline_mode = #tpu.pipeline_mode<synchronous>, transform_indices = @transform_11, window_bounds = array<i64: 1, 32>}, {pipeline_mode = #tpu.pipeline_mode<synchronous>, transform_indices = @transform_12, window_bounds = array<i64: 1, 32>}, {transform_indices = @transform_13, window_bounds = array<i64: 1, 8, 32>}, {transform_indices = @transform_14, window_bounds = array<i64: 1, 4, 8, 8>}]} {
    %c0 = arith.constant 0 : index
    %c0_0 = arith.constant 0 : index
    %c0_1 = arith.constant 0 : index
    %0 = vector.load %arg1[%c0, %c0_0, %c0_1] : memref<1x8x32xf32, #tpu.memory_space<vmem>>, vector<1x8x32xf32>
    %1 = vector.shape_cast %0 : vector<1x8x32xf32> to vector<8x32xf32>
    %c0_2 = arith.constant 0 : index
    %c0_3 = arith.constant 0 : index
    %c0_4 = arith.constant 0 : index
    %2 = vector.load %arg2[%c0_2, %c0_3, %c0_4] : memref<1x8x32xf32, #tpu.memory_space<vmem>>, vector<1x8x32xf32>
    %3 = vector.shape_cast %2 : vector<1x8x32xf32> to vector<8x32xf32>
    %c0_5 = arith.constant 0 : index
    %c0_6 = arith.constant 0 : index
    %c0_7 = arith.constant 0 : index
    %4 = vector.load %arg3[%c0_5, %c0_6, %c0_7] : memref<1x1x8xi32, #tpu.memory_space<vmem>>, vector<1x1x8xi32>
    %5 = vector.shape_cast %4 : vector<1x1x8xi32> to vector<1x8xi32>
    %c0_i32 = arith.constant 0 : i32
    %6 = vector.broadcast %c0_i32 : i32 to vector<1x8xi32>
    %7 = arith.cmpi eq, %5, %6 : vector<1x8xi32>
    %cst = arith.constant -3.40282347E+38 : f32
    %cst_8 = arith.constant 0.000000e+00 : f32
    %8 = vector.broadcast %cst : f32 to vector<1x8xf32>
    %9 = vector.broadcast %cst_8 : f32 to vector<1x8xf32>
    %10 = arith.select %7, %8, %9 : vector<1x8xi1>, vector<1x8xf32>
    %c0_9 = arith.constant 0 : index
    %c0_10 = arith.constant 0 : index
    %c0_11 = arith.constant 0 : index
    %11 = vector.load %arg4[%c0_9, %c0_10, %c0_11] : memref<4x32x8xf32, #tpu.memory_space<vmem>>, vector<1x32x8xf32>
    %12 = vector.shape_cast %11 : vector<1x32x8xf32> to vector<32x8xf32>
    %cst_12 = arith.constant dense<0.000000e+00> : vector<8x8xf32>
    %13 = tpu.matmul %1, %12, %cst_12 {dimension_numbers = #tpu.dot_dimension_numbers<[1], [0], [0], [1], [0, 0, 1, 1], [], []>} : vector<8x32xf32>, vector<32x8xf32>, vector<8x8xf32> -> vector<8x8xf32>
    %c0_13 = arith.constant 0 : index
    %c0_14 = arith.constant 0 : index
    %c0_15 = arith.constant 0 : index
    %14 = vector.load %arg5[%c0_13, %c0_14, %c0_15] : memref<4x1x8xf32, #tpu.memory_space<vmem>>, vector<1x1x8xf32>
    %15 = vector.shape_cast %14 : vector<1x1x8xf32> to vector<1x8xf32>
    %16 = vector.broadcast %15 : vector<1x8xf32> to vector<8x8xf32>
    %17 = arith.addf %13, %16 : vector<8x8xf32>
    %c0_16 = arith.constant 0 : index
    %c0_17 = arith.constant 0 : index
    %c0_18 = arith.constant 0 : index
    %18 = vector.load %arg6[%c0_16, %c0_17, %c0_18] : memref<4x32x8xf32, #tpu.memory_space<vmem>>, vector<1x32x8xf32>
    %19 = vector.shape_cast %18 : vector<1x32x8xf32> to vector<32x8xf32>
    %cst_19 = arith.constant dense<0.000000e+00> : vector<8x8xf32>
    %20 = tpu.matmul %3, %19, %cst_19 {dimension_numbers = #tpu.dot_dimension_numbers<[1], [0], [0], [1], [0, 0, 1, 1], [], []>} : vector<8x32xf32>, vector<32x8xf32>, vector<8x8xf32> -> vector<8x8xf32>
    %c0_20 = arith.constant 0 : index
    %c0_21 = arith.constant 0 : index
    %c0_22 = arith.constant 0 : index
    %21 = vector.load %arg7[%c0_20, %c0_21, %c0_22] : memref<4x1x8xf32, #tpu.memory_space<vmem>>, vector<1x1x8xf32>
    %22 = vector.shape_cast %21 : vector<1x1x8xf32> to vector<1x8xf32>
    %23 = vector.broadcast %22 : vector<1x8xf32> to vector<8x8xf32>
    %24 = arith.addf %20, %23 : vector<8x8xf32>
    %c0_23 = arith.constant 0 : index
    %c0_24 = arith.constant 0 : index
    %c0_25 = arith.constant 0 : index
    %25 = vector.load %arg8[%c0_23, %c0_24, %c0_25] : memref<4x32x8xf32, #tpu.memory_space<vmem>>, vector<1x32x8xf32>
    %26 = vector.shape_cast %25 : vector<1x32x8xf32> to vector<32x8xf32>
    %cst_26 = arith.constant dense<0.000000e+00> : vector<8x8xf32>
    %27 = tpu.matmul %3, %26, %cst_26 {dimension_numbers = #tpu.dot_dimension_numbers<[1], [0], [0], [1], [0, 0, 1, 1], [], []>} : vector<8x32xf32>, vector<32x8xf32>, vector<8x8xf32> -> vector<8x8xf32>
    %c0_27 = arith.constant 0 : index
    %c0_28 = arith.constant 0 : index
    %c0_29 = arith.constant 0 : index
    %28 = vector.load %arg9[%c0_27, %c0_28, %c0_29] : memref<4x1x8xf32, #tpu.memory_space<vmem>>, vector<1x1x8xf32>
    %29 = vector.shape_cast %28 : vector<1x1x8xf32> to vector<1x8xf32>
    %30 = vector.broadcast %29 : vector<1x8xf32> to vector<8x8xf32>
    %31 = arith.addf %27, %30 : vector<8x8xf32>
    %cst_30 = arith.constant dense<0.000000e+00> : vector<8x8xf32>
    %32 = tpu.matmul %17, %24, %cst_30 {dimension_numbers = #tpu.dot_dimension_numbers<[1], [1], [0], [0], [0, 0, 1, 0], [], []>} : vector<8x8xf32>, vector<8x8xf32>, vector<8x8xf32> -> vector<8x8xf32>
    %33 = vector.broadcast %10 : vector<1x8xf32> to vector<8x8xf32>
    %34 = arith.addf %32, %33 : vector<8x8xf32>
    %cst_31 = arith.constant dense<0xFF800000> : vector<8xf32>
    %35 = vector.multi_reduction <maximumf>, %34, %cst_31 [1] : vector<8x8xf32> to vector<8xf32>
    %36 = vector.shape_cast %35 : vector<8xf32> to vector<8x1xf32>
    %37 = vector.broadcast %36 : vector<8x1xf32> to vector<8x8xf32>
    %38 = arith.subf %34, %37 : vector<8x8xf32>
    %39 = math.exp %38 : vector<8x8xf32>
    %cst_32 = arith.constant dense<0.000000e+00> : vector<8xf32>
    %40 = vector.multi_reduction <add>, %39, %cst_32 [1] : vector<8x8xf32> to vector<8xf32>
    %41 = vector.shape_cast %40 : vector<8xf32> to vector<8x1xf32>
    %42 = tpu.reciprocal %41 {approx = true} : vector<8x1xf32> -> vector<8x1xf32>
    %43 = vector.broadcast %42 : vector<8x1xf32> to vector<8x8xf32>
    %44 = arith.mulf %39, %43 : vector<8x8xf32>
    %c0_33 = arith.constant 0 : index
    %c0_34 = arith.constant 0 : index
    %c0_35 = arith.constant 0 : index
    %c0_36 = arith.constant 0 : index
    %45 = vector.load %arg15[%c0_33, %c0_34, %c0_35, %c0_36] : memref<1x4x8x8xf32, #tpu.memory_space<vmem>>, vector<1x1x8x8xf32>
    %46 = vector.shape_cast %45 : vector<1x1x8x8xf32> to vector<8x8xf32>
    %47 = vector.shape_cast %44 : vector<8x8xf32> to vector<1x1x8x8xf32>
    tpu.vector_store %arg15[%c0_33, %c0_34, %c0_35, %c0_36], %47 {strides = array<i32>} : memref<1x4x8x8xf32, #tpu.memory_space<vmem>>, vector<1x1x8x8xf32>,
    %cst_37 = arith.constant dense<0.000000e+00> : vector<8x8xf32>
    %48 = tpu.matmul %44, %31, %cst_37 {dimension_numbers = #tpu.dot_dimension_numbers<[1], [0], [0], [1], [0, 0, 1, 1], [], []>} : vector<8x8xf32>, vector<8x8xf32>, vector<8x8xf32> -> vector<8x8xf32>
    %c0_38 = arith.constant 0 : index
    %c0_39 = arith.constant 0 : index
    %c0_40 = arith.constant 0 : index
    %49 = vector.load %arg10[%c0_38, %c0_39, %c0_40] : memref<4x8x32xf32, #tpu.memory_space<vmem>>, vector<1x8x32xf32>
    %50 = vector.shape_cast %49 : vector<1x8x32xf32> to vector<8x32xf32>
    %cst_41 = arith.constant dense<0.000000e+00> : vector<8x32xf32>
    %51 = tpu.matmul %48, %50, %cst_41 {dimension_numbers = #tpu.dot_dimension_numbers<[1], [0], [0], [1], [0, 0, 1, 1], [], []>} : vector<8x8xf32>, vector<8x32xf32>, vector<8x32xf32> -> vector<8x32xf32>
    %c1 = arith.constant 1 : index
    %c0_42 = arith.constant 0 : index
    %c0_43 = arith.constant 0 : index
    %52 = vector.load %arg4[%c1, %c0_42, %c0_43] : memref<4x32x8xf32, #tpu.memory_space<vmem>>, vector<1x32x8xf32>
    %53 = vector.shape_cast %52 : vector<1x32x8xf32> to vector<32x8xf32>
    %cst_44 = arith.constant dense<0.000000e+00> : vector<8x8xf32>
    %54 = tpu.matmul %1, %53, %cst_44 {dimension_numbers = #tpu.dot_dimension_numbers<[1], [0], [0], [1], [0, 0, 1, 1], [], []>} : vector<8x32xf32>, vector<32x8xf32>, vector<8x8xf32> -> vector<8x8xf32>
    %c1_45 = arith.constant 1 : index
    %c0_46 = arith.constant 0 : index
    %c0_47 = arith.constant 0 : index
    %55 = vector.load %arg5[%c1_45, %c0_46, %c0_47] : memref<4x1x8xf32, #tpu.memory_space<vmem>>, vector<1x1x8xf32>
    %56 = vector.shape_cast %55 : vector<1x1x8xf32> to vector<1x8xf32>
    %57 = vector.broadcast %56 : vector<1x8xf32> to vector<8x8xf32>
    %58 = arith.addf %54, %57 : vector<8x8xf32>
    %c1_48 = arith.constant 1 : index
    %c0_49 = arith.constant 0 : index
    %c0_50 = arith.constant 0 : index
    %59 = vector.load %arg6[%c1_48, %c0_49, %c0_50] : memref<4x32x8xf32, #tpu.memory_space<vmem>>, vector<1x32x8xf32>
    %60 = vector.shape_cast %59 : vector<1x32x8xf32> to vector<32x8xf32>
    %cst_51 = arith.constant dense<0.000000e+00> : vector<8x8xf32>
    %61 = tpu.matmul %3, %60, %cst_51 {dimension_numbers = #tpu.dot_dimension_numbers<[1], [0], [0], [1], [0, 0, 1, 1], [], []>} : vector<8x32xf32>, vector<32x8xf32>, vector<8x8xf32> -> vector<8x8xf32>
    %c1_52 = arith.constant 1 : index
    %c0_53 = arith.constant 0 : index
    %c0_54 = arith.constant 0 : index
    %62 = vector.load %arg7[%c1_52, %c0_53, %c0_54] : memref<4x1x8xf32, #tpu.memory_space<vmem>>, vector<1x1x8xf32>
    %63 = vector.shape_cast %62 : vector<1x1x8xf32> to vector<1x8xf32>
    %64 = vector.broadcast %63 : vector<1x8xf32> to vector<8x8xf32>
    %65 = arith.addf %61, %64 : vector<8x8xf32>
    %c1_55 = arith.constant 1 : index
    %c0_56 = arith.constant 0 : index
    %c0_57 = arith.constant 0 : index
    %66 = vector.load %arg8[%c1_55, %c0_56, %c0_57] : memref<4x32x8xf32, #tpu.memory_space<vmem>>, vector<1x32x8xf32>
    %67 = vector.shape_cast %66 : vector<1x32x8xf32> to vector<32x8xf32>
    %cst_58 = arith.constant dense<0.000000e+00> : vector<8x8xf32>
    %68 = tpu.matmul %3, %67, %cst_58 {dimension_numbers = #tpu.dot_dimension_numbers<[1], [0], [0], [1], [0, 0, 1, 1], [], []>} : vector<8x32xf32>, vector<32x8xf32>, vector<8x8xf32> -> vector<8x8xf32>
    %c1_59 = arith.constant 1 : index
    %c0_60 = arith.constant 0 : index
    %c0_61 = arith.constant 0 : index
    %69 = vector.load %arg9[%c1_59, %c0_60, %c0_61] : memref<4x1x8xf32, #tpu.memory_space<vmem>>, vector<1x1x8xf32>
    %70 = vector.shape_cast %69 : vector<1x1x8xf32> to vector<1x8xf32>
    %71 = vector.broadcast %70 : vector<1x8xf32> to vector<8x8xf32>
    %72 = arith.addf %68, %71 : vector<8x8xf32>
    %cst_62 = arith.constant dense<0.000000e+00> : vector<8x8xf32>
    %73 = tpu.matmul %58, %65, %cst_62 {dimension_numbers = #tpu.dot_dimension_numbers<[1], [1], [0], [0], [0, 0, 1, 0], [], []>} : vector<8x8xf32>, vector<8x8xf32>, vector<8x8xf32> -> vector<8x8xf32>
    %74 = vector.broadcast %10 : vector<1x8xf32> to vector<8x8xf32>
    %75 = arith.addf %73, %74 : vector<8x8xf32>
    %cst_63 = arith.constant dense<0xFF800000> : vector<8xf32>
    %76 = vector.multi_reduction <maximumf>, %75, %cst_63 [1] : vector<8x8xf32> to vector<8xf32>
    %77 = vector.shape_cast %76 : vector<8xf32> to vector<8x1xf32>
    %78 = vector.broadcast %77 : vector<8x1xf32> to vector<8x8xf32>
    %79 = arith.subf %75, %78 : vector<8x8xf32>
    %80 = math.exp %79 : vector<8x8xf32>
    %cst_64 = arith.constant dense<0.000000e+00> : vector<8xf32>
    %81 = vector.multi_reduction <add>, %80, %cst_64 [1] : vector<8x8xf32> to vector<8xf32>
    %82 = vector.shape_cast %81 : vector<8xf32> to vector<8x1xf32>
    %83 = tpu.reciprocal %82 {approx = true} : vector<8x1xf32> -> vector<8x1xf32>
    %84 = vector.broadcast %83 : vector<8x1xf32> to vector<8x8xf32>
    %85 = arith.mulf %80, %84 : vector<8x8xf32>
    %c0_65 = arith.constant 0 : index
    %c1_66 = arith.constant 1 : index
    %c0_67 = arith.constant 0 : index
    %c0_68 = arith.constant 0 : index
    %86 = vector.load %arg15[%c0_65, %c1_66, %c0_67, %c0_68] : memref<1x4x8x8xf32, #tpu.memory_space<vmem>>, vector<1x1x8x8xf32>
    %87 = vector.shape_cast %86 : vector<1x1x8x8xf32> to vector<8x8xf32>
    %88 = vector.shape_cast %85 : vector<8x8xf32> to vector<1x1x8x8xf32>
    tpu.vector_store %arg15[%c0_65, %c1_66, %c0_67, %c0_68], %88 {strides = array<i32>} : memref<1x4x8x8xf32, #tpu.memory_space<vmem>>, vector<1x1x8x8xf32>,
    %cst_69 = arith.constant dense<0.000000e+00> : vector<8x8xf32>
    %89 = tpu.matmul %85, %72, %cst_69 {dimension_numbers = #tpu.dot_dimension_numbers<[1], [0], [0], [1], [0, 0, 1, 1], [], []>} : vector<8x8xf32>, vector<8x8xf32>, vector<8x8xf32> -> vector<8x8xf32>
    %c1_70 = arith.constant 1 : index
    %c0_71 = arith.constant 0 : index
    %c0_72 = arith.constant 0 : index
    %90 = vector.load %arg10[%c1_70, %c0_71, %c0_72] : memref<4x8x32xf32, #tpu.memory_space<vmem>>, vector<1x8x32xf32>
    %91 = vector.shape_cast %90 : vector<1x8x32xf32> to vector<8x32xf32>
    %cst_73 = arith.constant dense<0.000000e+00> : vector<8x32xf32>
    %92 = tpu.matmul %89, %91, %cst_73 {dimension_numbers = #tpu.dot_dimension_numbers<[1], [0], [0], [1], [0, 0, 1, 1], [], []>} : vector<8x8xf32>, vector<8x32xf32>, vector<8x32xf32> -> vector<8x32xf32>
    %93 = arith.addf %51, %92 : vector<8x32xf32>
    %c2 = arith.constant 2 : index
    %c0_74 = arith.constant 0 : index
    %c0_75 = arith.constant 0 : index
    %94 = vector.load %arg4[%c2, %c0_74, %c0_75] : memref<4x32x8xf32, #tpu.memory_space<vmem>>, vector<1x32x8xf32>
    %95 = vector.shape_cast %94 : vector<1x32x8xf32> to vector<32x8xf32>
    %cst_76 = arith.constant dense<0.000000e+00> : vector<8x8xf32>
    %96 = tpu.matmul %1, %95, %cst_76 {dimension_numbers = #tpu.dot_dimension_numbers<[1], [0], [0], [1], [0, 0, 1, 1], [], []>} : vector<8x32xf32>, vector<32x8xf32>, vector<8x8xf32> -> vector<8x8xf32>
    %c2_77 = arith.constant 2 : index
    %c0_78 = arith.constant 0 : index
    %c0_79 = arith.constant 0 : index
    %97 = vector.load %arg5[%c2_77, %c0_78, %c0_79] : memref<4x1x8xf32, #tpu.memory_space<vmem>>, vector<1x1x8xf32>
    %98 = vector.shape_cast %97 : vector<1x1x8xf32> to vector<1x8xf32>
    %99 = vector.broadcast %98 : vector<1x8xf32> to vector<8x8xf32>
    %100 = arith.addf %96, %99 : vector<8x8xf32>
    %c2_80 = arith.constant 2 : index
    %c0_81 = arith.constant 0 : index
    %c0_82 = arith.constant 0 : index
    %101 = vector.load %arg6[%c2_80, %c0_81, %c0_82] : memref<4x32x8xf32, #tpu.memory_space<vmem>>, vector<1x32x8xf32>
    %102 = vector.shape_cast %101 : vector<1x32x8xf32> to vector<32x8xf32>
    %cst_83 = arith.constant dense<0.000000e+00> : vector<8x8xf32>
    %103 = tpu.matmul %3, %102, %cst_83 {dimension_numbers = #tpu.dot_dimension_numbers<[1], [0], [0], [1], [0, 0, 1, 1], [], []>} : vector<8x32xf32>, vector<32x8xf32>, vector<8x8xf32> -> vector<8x8xf32>
    %c2_84 = arith.constant 2 : index
    %c0_85 = arith.constant 0 : index
    %c0_86 = arith.constant 0 : index
    %104 = vector.load %arg7[%c2_84, %c0_85, %c0_86] : memref<4x1x8xf32, #tpu.memory_space<vmem>>, vector<1x1x8xf32>
    %105 = vector.shape_cast %104 : vector<1x1x8xf32> to vector<1x8xf32>
    %106 = vector.broadcast %105 : vector<1x8xf32> to vector<8x8xf32>
    %107 = arith.addf %103, %106 : vector<8x8xf32>
    %c2_87 = arith.constant 2 : index
    %c0_88 = arith.constant 0 : index
    %c0_89 = arith.constant 0 : index
    %108 = vector.load %arg8[%c2_87, %c0_88, %c0_89] : memref<4x32x8xf32, #tpu.memory_space<vmem>>, vector<1x32x8xf32>
    %109 = vector.shape_cast %108 : vector<1x32x8xf32> to vector<32x8xf32>
    %cst_90 = arith.constant dense<0.000000e+00> : vector<8x8xf32>
    %110 = tpu.matmul %3, %109, %cst_90 {dimension_numbers = #tpu.dot_dimension_numbers<[1], [0], [0], [1], [0, 0, 1, 1], [], []>} : vector<8x32xf32>, vector<32x8xf32>, vector<8x8xf32> -> vector<8x8xf32>
    %c2_91 = arith.constant 2 : index
    %c0_92 = arith.constant 0 : index
    %c0_93 = arith.constant 0 : index
    %111 = vector.load %arg9[%c2_91, %c0_92, %c0_93] : memref<4x1x8xf32, #tpu.memory_space<vmem>>, vector<1x1x8xf32>
    %112 = vector.shape_cast %111 : vector<1x1x8xf32> to vector<1x8xf32>
    %113 = vector.broadcast %112 : vector<1x8xf32> to vector<8x8xf32>
    %114 = arith.addf %110, %113 : vector<8x8xf32>
    %cst_94 = arith.constant dense<0.000000e+00> : vector<8x8xf32>
    %115 = tpu.matmul %100, %107, %cst_94 {dimension_numbers = #tpu.dot_dimension_numbers<[1], [1], [0], [0], [0, 0, 1, 0], [], []>} : vector<8x8xf32>, vector<8x8xf32>, vector<8x8xf32> -> vector<8x8xf32>
    %116 = vector.broadcast %10 : vector<1x8xf32> to vector<8x8xf32>
    %117 = arith.addf %115, %116 : vector<8x8xf32>
    %cst_95 = arith.constant dense<0xFF800000> : vector<8xf32>
    %118 = vector.multi_reduction <maximumf>, %117, %cst_95 [1] : vector<8x8xf32> to vector<8xf32>
    %119 = vector.shape_cast %118 : vector<8xf32> to vector<8x1xf32>
    %120 = vector.broadcast %119 : vector<8x1xf32> to vector<8x8xf32>
    %121 = arith.subf %117, %120 : vector<8x8xf32>
    %122 = math.exp %121 : vector<8x8xf32>
    %cst_96 = arith.constant dense<0.000000e+00> : vector<8xf32>
    %123 = vector.multi_reduction <add>, %122, %cst_96 [1] : vector<8x8xf32> to vector<8xf32>
    %124 = vector.shape_cast %123 : vector<8xf32> to vector<8x1xf32>
    %125 = tpu.reciprocal %124 {approx = true} : vector<8x1xf32> -> vector<8x1xf32>
    %126 = vector.broadcast %125 : vector<8x1xf32> to vector<8x8xf32>
    %127 = arith.mulf %122, %126 : vector<8x8xf32>
    %c0_97 = arith.constant 0 : index
    %c2_98 = arith.constant 2 : index
    %c0_99 = arith.constant 0 : index
    %c0_100 = arith.constant 0 : index
    %128 = vector.load %arg15[%c0_97, %c2_98, %c0_99, %c0_100] : memref<1x4x8x8xf32, #tpu.memory_space<vmem>>, vector<1x1x8x8xf32>
    %129 = vector.shape_cast %128 : vector<1x1x8x8xf32> to vector<8x8xf32>
    %130 = vector.shape_cast %127 : vector<8x8xf32> to vector<1x1x8x8xf32>
    tpu.vector_store %arg15[%c0_97, %c2_98, %c0_99, %c0_100], %130 {strides = array<i32>} : memref<1x4x8x8xf32, #tpu.memory_space<vmem>>, vector<1x1x8x8xf32>,
    %cst_101 = arith.constant dense<0.000000e+00> : vector<8x8xf32>
    %131 = tpu.matmul %127, %114, %cst_101 {dimension_numbers = #tpu.dot_dimension_numbers<[1], [0], [0], [1], [0, 0, 1, 1], [], []>} : vector<8x8xf32>, vector<8x8xf32>, vector<8x8xf32> -> vector<8x8xf32>
    %c2_102 = arith.constant 2 : index
    %c0_103 = arith.constant 0 : index
    %c0_104 = arith.constant 0 : index
    %132 = vector.load %arg10[%c2_102, %c0_103, %c0_104] : memref<4x8x32xf32, #tpu.memory_space<vmem>>, vector<1x8x32xf32>
    %133 = vector.shape_cast %132 : vector<1x8x32xf32> to vector<8x32xf32>
    %cst_105 = arith.constant dense<0.000000e+00> : vector<8x32xf32>
    %134 = tpu.matmul %131, %133, %cst_105 {dimension_numbers = #tpu.dot_dimension_numbers<[1], [0], [0], [1], [0, 0, 1, 1], [], []>} : vector<8x8xf32>, vector<8x32xf32>, vector<8x32xf32> -> vector<8x32xf32>
    %135 = arith.addf %93, %134 : vector<8x32xf32>
    %c3 = arith.constant 3 : index
    %c0_106 = arith.constant 0 : index
    %c0_107 = arith.constant 0 : index
    %136 = vector.load %arg4[%c3, %c0_106, %c0_107] : memref<4x32x8xf32, #tpu.memory_space<vmem>>, vector<1x32x8xf32>
    %137 = vector.shape_cast %136 : vector<1x32x8xf32> to vector<32x8xf32>
    %cst_108 = arith.constant dense<0.000000e+00> : vector<8x8xf32>
    %138 = tpu.matmul %1, %137, %cst_108 {dimension_numbers = #tpu.dot_dimension_numbers<[1], [0], [0], [1], [0, 0, 1, 1], [], []>} : vector<8x32xf32>, vector<32x8xf32>, vector<8x8xf32> -> vector<8x8xf32>
    %c3_109 = arith.constant 3 : index
    %c0_110 = arith.constant 0 : index
    %c0_111 = arith.constant 0 : index
    %139 = vector.load %arg5[%c3_109, %c0_110, %c0_111] : memref<4x1x8xf32, #tpu.memory_space<vmem>>, vector<1x1x8xf32>
    %140 = vector.shape_cast %139 : vector<1x1x8xf32> to vector<1x8xf32>
    %141 = vector.broadcast %140 : vector<1x8xf32> to vector<8x8xf32>
    %142 = arith.addf %138, %141 : vector<8x8xf32>
    %c3_112 = arith.constant 3 : index
    %c0_113 = arith.constant 0 : index
    %c0_114 = arith.constant 0 : index
    %143 = vector.load %arg6[%c3_112, %c0_113, %c0_114] : memref<4x32x8xf32, #tpu.memory_space<vmem>>, vector<1x32x8xf32>
    %144 = vector.shape_cast %143 : vector<1x32x8xf32> to vector<32x8xf32>
    %cst_115 = arith.constant dense<0.000000e+00> : vector<8x8xf32>
    %145 = tpu.matmul %3, %144, %cst_115 {dimension_numbers = #tpu.dot_dimension_numbers<[1], [0], [0], [1], [0, 0, 1, 1], [], []>} : vector<8x32xf32>, vector<32x8xf32>, vector<8x8xf32> -> vector<8x8xf32>
    %c3_116 = arith.constant 3 : index
    %c0_117 = arith.constant 0 : index
    %c0_118 = arith.constant 0 : index
    %146 = vector.load %arg7[%c3_116, %c0_117, %c0_118] : memref<4x1x8xf32, #tpu.memory_space<vmem>>, vector<1x1x8xf32>
    %147 = vector.shape_cast %146 : vector<1x1x8xf32> to vector<1x8xf32>
    %148 = vector.broadcast %147 : vector<1x8xf32> to vector<8x8xf32>
    %149 = arith.addf %145, %148 : vector<8x8xf32>
    %c3_119 = arith.constant 3 : index
    %c0_120 = arith.constant 0 : index
    %c0_121 = arith.constant 0 : index
    %150 = vector.load %arg8[%c3_119, %c0_120, %c0_121] : memref<4x32x8xf32, #tpu.memory_space<vmem>>, vector<1x32x8xf32>
    %151 = vector.shape_cast %150 : vector<1x32x8xf32> to vector<32x8xf32>
    %cst_122 = arith.constant dense<0.000000e+00> : vector<8x8xf32>
    %152 = tpu.matmul %3, %151, %cst_122 {dimension_numbers = #tpu.dot_dimension_numbers<[1], [0], [0], [1], [0, 0, 1, 1], [], []>} : vector<8x32xf32>, vector<32x8xf32>, vector<8x8xf32> -> vector<8x8xf32>
    %c3_123 = arith.constant 3 : index
    %c0_124 = arith.constant 0 : index
    %c0_125 = arith.constant 0 : index
    %153 = vector.load %arg9[%c3_123, %c0_124, %c0_125] : memref<4x1x8xf32, #tpu.memory_space<vmem>>, vector<1x1x8xf32>
    %154 = vector.shape_cast %153 : vector<1x1x8xf32> to vector<1x8xf32>
    %155 = vector.broadcast %154 : vector<1x8xf32> to vector<8x8xf32>
    %156 = arith.addf %152, %155 : vector<8x8xf32>
    %cst_126 = arith.constant dense<0.000000e+00> : vector<8x8xf32>
    %157 = tpu.matmul %142, %149, %cst_126 {dimension_numbers = #tpu.dot_dimension_numbers<[1], [1], [0], [0], [0, 0, 1, 0], [], []>} : vector<8x8xf32>, vector<8x8xf32>, vector<8x8xf32> -> vector<8x8xf32>
    %158 = vector.broadcast %10 : vector<1x8xf32> to vector<8x8xf32>
    %159 = arith.addf %157, %158 : vector<8x8xf32>
    %cst_127 = arith.constant dense<0xFF800000> : vector<8xf32>
    %160 = vector.multi_reduction <maximumf>, %159, %cst_127 [1] : vector<8x8xf32> to vector<8xf32>
    %161 = vector.shape_cast %160 : vector<8xf32> to vector<8x1xf32>
    %162 = vector.broadcast %161 : vector<8x1xf32> to vector<8x8xf32>
    %163 = arith.subf %159, %162 : vector<8x8xf32>
    %164 = math.exp %163 : vector<8x8xf32>
    %cst_128 = arith.constant dense<0.000000e+00> : vector<8xf32>
    %165 = vector.multi_reduction <add>, %164, %cst_128 [1] : vector<8x8xf32> to vector<8xf32>
    %166 = vector.shape_cast %165 : vector<8xf32> to vector<8x1xf32>
    %167 = tpu.reciprocal %166 {approx = true} : vector<8x1xf32> -> vector<8x1xf32>
    %168 = vector.broadcast %167 : vector<8x1xf32> to vector<8x8xf32>
    %169 = arith.mulf %164, %168 : vector<8x8xf32>
    %c0_129 = arith.constant 0 : index
    %c3_130 = arith.constant 3 : index
    %c0_131 = arith.constant 0 : index
    %c0_132 = arith.constant 0 : index
    %170 = vector.load %arg15[%c0_129, %c3_130, %c0_131, %c0_132] : memref<1x4x8x8xf32, #tpu.memory_space<vmem>>, vector<1x1x8x8xf32>
    %171 = vector.shape_cast %170 : vector<1x1x8x8xf32> to vector<8x8xf32>
    %172 = vector.shape_cast %169 : vector<8x8xf32> to vector<1x1x8x8xf32>
    tpu.vector_store %arg15[%c0_129, %c3_130, %c0_131, %c0_132], %172 {strides = array<i32>} : memref<1x4x8x8xf32, #tpu.memory_space<vmem>>, vector<1x1x8x8xf32>,
    %cst_133 = arith.constant dense<0.000000e+00> : vector<8x8xf32>
    %173 = tpu.matmul %169, %156, %cst_133 {dimension_numbers = #tpu.dot_dimension_numbers<[1], [0], [0], [1], [0, 0, 1, 1], [], []>} : vector<8x8xf32>, vector<8x8xf32>, vector<8x8xf32> -> vector<8x8xf32>
    %c3_134 = arith.constant 3 : index
    %c0_135 = arith.constant 0 : index
    %c0_136 = arith.constant 0 : index
    %174 = vector.load %arg10[%c3_134, %c0_135, %c0_136] : memref<4x8x32xf32, #tpu.memory_space<vmem>>, vector<1x8x32xf32>
    %175 = vector.shape_cast %174 : vector<1x8x32xf32> to vector<8x32xf32>
    %cst_137 = arith.constant dense<0.000000e+00> : vector<8x32xf32>
    %176 = tpu.matmul %173, %175, %cst_137 {dimension_numbers = #tpu.dot_dimension_numbers<[1], [0], [0], [1], [0, 0, 1, 1], [], []>} : vector<8x8xf32>, vector<8x32xf32>, vector<8x32xf32> -> vector<8x32xf32>
    %177 = arith.addf %135, %176 : vector<8x32xf32>
    %c0_138 = arith.constant 0 : index
    %c0_139 = arith.constant 0 : index
    %178 = vector.load %arg11[%c0_138, %c0_139] : memref<1x32xf32, #tpu.memory_space<vmem>>, vector<1x32xf32>
    %179 = vector.broadcast %178 : vector<1x32xf32> to vector<8x32xf32>
    %180 = arith.addf %177, %179 : vector<8x32xf32>
    %181 = arith.addf %180, %1 : vector<8x32xf32>
    %cst_140 = arith.constant dense<0.000000e+00> : vector<8xf32>
    %182 = vector.multi_reduction <add>, %181, %cst_140 [1] : vector<8x32xf32> to vector<8xf32>
    %183 = vector.shape_cast %182 : vector<8xf32> to vector<8x1xf32>
    %cst_141 = arith.constant 3.200000e+01 : f32
    %184 = vector.broadcast %cst_141 : f32 to vector<8x1xf32>
    %185 = arith.divf %183, %184 : vector<8x1xf32>
    %186 = vector.broadcast %185 : vector<8x1xf32> to vector<8x32xf32>
    %187 = arith.subf %181, %186 : vector<8x32xf32>
    %188 = arith.mulf %187, %187 : vector<8x32xf32>
    %cst_142 = arith.constant dense<0.000000e+00> : vector<8xf32>
    %189 = vector.multi_reduction <add>, %188, %cst_142 [1] : vector<8x32xf32> to vector<8xf32>
    %190 = vector.shape_cast %189 : vector<8xf32> to vector<8x1xf32>
    %cst_143 = arith.constant 3.200000e+01 : f32
    %191 = vector.broadcast %cst_143 : f32 to vector<8x1xf32>
    %192 = arith.divf %190, %191 : vector<8x1xf32>
    %193 = vector.broadcast %185 : vector<8x1xf32> to vector<8x32xf32>
    %194 = arith.subf %181, %193 : vector<8x32xf32>
    %cst_144 = arith.constant 9.99999974E-6 : f32
    %195 = vector.broadcast %cst_144 : f32 to vector<8x1xf32>
    %196 = arith.addf %192, %195 : vector<8x1xf32>
    %197 = math.rsqrt %196 : vector<8x1xf32>
    %198 = vector.broadcast %197 : vector<8x1xf32> to vector<8x32xf32>
    %199 = arith.mulf %194, %198 : vector<8x32xf32>
    %c0_145 = arith.constant 0 : index
    %c0_146 = arith.constant 0 : index
    %200 = vector.load %arg12[%c0_145, %c0_146] : memref<1x32xf32, #tpu.memory_space<vmem>>, vector<1x32xf32>
    %201 = vector.broadcast %200 : vector<1x32xf32> to vector<8x32xf32>
    %202 = arith.mulf %199, %201 : vector<8x32xf32>
    %c0_147 = arith.constant 0 : index
    %c0_148 = arith.constant 0 : index
    %203 = vector.load %arg13[%c0_147, %c0_148] : memref<1x32xf32, #tpu.memory_space<vmem>>, vector<1x32xf32>
    %204 = vector.broadcast %203 : vector<1x32xf32> to vector<8x32xf32>
    %205 = arith.addf %202, %204 : vector<8x32xf32>
    %c0_149 = arith.constant 0 : index
    %c0_150 = arith.constant 0 : index
    %c0_151 = arith.constant 0 : index
    %206 = vector.load %arg14[%c0_149, %c0_150, %c0_151] : memref<1x8x32xf32, #tpu.memory_space<vmem>>, vector<1x8x32xf32>
    %207 = vector.shape_cast %206 : vector<1x8x32xf32> to vector<8x32xf32>
    %208 = vector.shape_cast %205 : vector<8x32xf32> to vector<1x8x32xf32>
    tpu.vector_store %arg14[%c0_149, %c0_150, %c0_151], %208 {strides = array<i32>} : memref<1x8x32xf32, #tpu.memory_space<vmem>>, vector<1x8x32xf32>,
    return
  }
  func.func @transform_0(%arg0: i32) -> (i32, i32, i32) {
    %c0_i32 = arith.constant 0 : i32
    %c0_i32_0 = arith.constant 0 : i32
    %c0_i32_1 = arith.constant 0 : i32
    return %arg0, %c0_i32, %c0_i32_0 : i32, i32, i32
  }
  func.func @transform_1(%arg0: i32) -> (i32, i32, i32) {
    %c0_i32 = arith.constant 0 : i32
    %c0_i32_0 = arith.constant 0 : i32
    %c0_i32_1 = arith.constant 0 : i32
    return %arg0, %c0_i32, %c0_i32_0 : i32, i32, i32
  }
  func.func @transform_2(%arg0: i32) -> (i32, i32, i32) {
    %c0_i32 = arith.constant 0 : i32
    %c0_i32_0 = arith.constant 0 : i32
    %c0_i32_1 = arith.constant 0 : i32
    return %arg0, %c0_i32, %c0_i32_0 : i32, i32, i32
  }
  func.func @transform_3(%arg0: i32) -> (i32, i32, i32) {
    %c0_i32 = arith.constant 0 : i32
    %c0_i32_0 = arith.constant 0 : i32
    %c0_i32_1 = arith.constant 0 : i32
    %c0_i32_2 = arith.constant 0 : i32
    return %c0_i32, %c0_i32_0, %c0_i32_1 : i32, i32, i32
  }
  func.func @transform_4(%arg0: i32) -> (i32, i32, i32) {
    %c0_i32 = arith.constant 0 : i32
    %c0_i32_0 = arith.constant 0 : i32
    %c0_i32_1 = arith.constant 0 : i32
    %c0_i32_2 = arith.constant 0 : i32
    return %c0_i32, %c0_i32_0, %c0_i32_1 : i32, i32, i32
  }
  func.func @transform_5(%arg0: i32) -> (i32, i32, i32) {
    %c0_i32 = arith.constant 0 : i32
    %c0_i32_0 = arith.constant 0 : i32
    %c0_i32_1 = arith.constant 0 : i32
    %c0_i32_2 = arith.constant 0 : i32
    return %c0_i32, %c0_i32_0, %c0_i32_1 : i32, i32, i32
  }
  func.func @transform_6(%arg0: i32) -> (i32, i32, i32) {
    %c0_i32 = arith.constant 0 : i32
    %c0_i32_0 = arith.constant 0 : i32
    %c0_i32_1 = arith.constant 0 : i32
    %c0_i32_2 = arith.constant 0 : i32
    return %c0_i32, %c0_i32_0, %c0_i32_1 : i32, i32, i32
  }
  func.func @transform_7(%arg0: i32) -> (i32, i32, i32) {
    %c0_i32 = arith.constant 0 : i32
    %c0_i32_0 = arith.constant 0 : i32
    %c0_i32_1 = arith.constant 0 : i32
    %c0_i32_2 = arith.constant 0 : i32
    return %c0_i32, %c0_i32_0, %c0_i32_1 : i32, i32, i32
  }
  func.func @transform_8(%arg0: i32) -> (i32, i32, i32) {
    %c0_i32 = arith.constant 0 : i32
    %c0_i32_0 = arith.constant 0 : i32
    %c0_i32_1 = arith.constant 0 : i32
    %c0_i32_2 = arith.constant 0 : i32
    return %c0_i32, %c0_i32_0, %c0_i32_1 : i32, i32, i32
  }
  func.func @transform_9(%arg0: i32) -> (i32, i32, i32) {
    %c0_i32 = arith.constant 0 : i32
    %c0_i32_0 = arith.constant 0 : i32
    %c0_i32_1 = arith.constant 0 : i32
    %c0_i32_2 = arith.constant 0 : i32
    return %c0_i32, %c0_i32_0, %c0_i32_1 : i32, i32, i32
  }
  func.func @transform_10(%arg0: i32) -> (i32, i32) {
    %c0_i32 = arith.constant 0 : i32
    %c0_i32_0 = arith.constant 0 : i32
    %c0_i32_1 = arith.constant 0 : i32
    return %c0_i32, %c0_i32_0 : i32, i32
  }
  func.func @transform_11(%arg0: i32) -> (i32, i32) {
    %c0_i32 = arith.constant 0 : i32
    %c0_i32_0 = arith.constant 0 : i32
    %c0_i32_1 = arith.constant 0 : i32
    return %c0_i32, %c0_i32_0 : i32, i32
  }
  func.func @transform_12(%arg0: i32) -> (i32, i32) {
    %c0_i32 = arith.constant 0 : i32
    %c0_i32_0 = arith.constant 0 : i32
    %c0_i32_1 = arith.constant 0 : i32
    return %c0_i32, %c0_i32_0 : i32, i32
  }
  func.func @transform_13(%arg0: i32) -> (i32, i32, i32) {
    %c0_i32 = arith.constant 0 : i32
    %c0_i32_0 = arith.constant 0 : i32
    %c0_i32_1 = arith.constant 0 : i32
    return %arg0, %c0_i32, %c0_i32_0 : i32, i32, i32
  }
  func.func @transform_14(%arg0: i32) -> (i32, i32, i32, i32) {
    %c0_i32 = arith.constant 0 : i32
    %c0_i32_0 = arith.constant 0 : i32
    %c0_i32_1 = arith.constant 0 : i32
    %c0_i32_2 = arith.constant 0 : i32
    return %arg0, %c0_i32, %c0_i32_0, %c0_i32_1 : i32, i32, i32, i32
  }
}

</mosaic_0001>

<bundles_post_ra>
// kernel: tpu_custom_call.1
= control target key start
LH: loop header
LB: loop body
LE: loop exit
PB: predicated region body
PF: predicated region fallthrough
CT: control target
= control target key end

     0   :  { %s3861_s0 = inlined_call_operand.vmem [shape: f32[2,8,32], index: 0, kind: input, shape index: {}]   ;;  %s3862_s1 = inlined_call_operand.vmem [shape: f32[2,8,32], index: 1, kind: input, shape index: {}]   ;;  %s3863_s2 = inlined_call_operand.vmem [shape: s32[2,1,8], index: 2, kind: input, shape index: {}]   ;;  %s3864_s3 = inlined_call_operand.vmem [shape: f32[4,32,8], index: 3, kind: input, shape index: {}]   ;;  %s3865_s4 = inlined_call_operand.vmem [shape: f32[4,1,8], index: 4, kind: input, shape index: {}]   ;;  %s3866_s5 = inlined_call_operand.vmem [shape: f32[4,32,8], index: 5, kind: input, shape index: {}]   ;;  %s3867_s6 = inlined_call_operand.vmem [shape: f32[4,1,8], index: 6, kind: input, shape index: {}]   ;;  %s3868_s7 = inlined_call_operand.vmem [shape: f32[4,32,8], index: 7, kind: input, shape index: {}]   ;;  %s3869_s8 = inlined_call_operand.vmem [shape: f32[4,1,8], index: 8, kind: input, shape index: {}]   ;;  %s3870_s9 = inlined_call_operand.vmem [shape: f32[4,8,32], index: 9, kind: input, shape index: {}]   ;;  %s3871_s10 = inlined_call_operand.vmem [shape: f32[1,32], index: 10, kind: input, shape index: {}]   ;;  %s3872_s11 = inlined_call_operand.vmem [shape: f32[1,32], index: 11, kind: input, shape index: {}]   ;;  %s3873_s12 = inlined_call_operand.vmem [shape: f32[1,32], index: 12, kind: input, shape index: {}]   ;;  %s3874_s13 = inlined_call_operand.hbm [shape: f32[2,8,32], index: 13, kind: output, shape index: {0}]   ;;  %s3875_s14 = inlined_call_operand.hbm [shape: f32[2,4,8,8], index: 14, kind: output, shape index: {1}]  }
   0x1   :  { %3879 = sst [smem:[#allocation11_spill]] %s3861_s0 }
   0x2   :  { %3880 = sst [smem:[#allocation12_spill]] %s3862_s1 }
   0x3   :  { %3881 = sst [smem:[#allocation13_spill]] %s3863_s2 }
   0x4   :  { %20 = vsyncpa [#allocation3], 0 }
   0x5   :  { %22 = vsyncpa [#allocation3 + $0x1], 0 }
   0x6   :  { %23 = vsyncpa [#allocation5], 0 }
   0x7   :  { %25 = vsyncpa [#allocation5 + $0x1], 0  ;;  %s3352_s29 = smov 0   ;;  %s3354_s30 = smov 0  }
   0x8   :  { %s3356_s15 = smov 0   ;;  %s3358_s16 = smov 0  }
   0x9 LB: > { %3882 = sst [smem:[#allocation8_spill]] %s3264_s15  ;;  %s3373_s17 = sadd.s32 4294967295, %s3268_s16   ;;  %s3268_s16 = sphi %s3358_s16, %s3891_s16   ;;  %s3264_s15 = sphi %s3356_s15, %s3893_s15   ;;  %s3260_s30 = sphi %s3354_s30, %s3895_s30   ;;  %s3256_s29 = sphi %s3352_s29, %s3894_s29  }
   0xa   : > { %s2649_s18 = sadd.s32 4294967294, %s3268_s16   ;;  %s3377_s19 = sadd.s32 1, %s3268_s16  }
   0xb   : > { %3883 = sst [smem:[#allocation9_spill]] %s3377_s19  ;;  %s326_s20 = sadd.s32 1, %s3264_s15 }
   0xc   : > { %s323_s21 = ssub.s32 %s3268_s16, %s3377_s19  ;;  %p336_p0 = scmp.ne.s32.totalorder %s3264_s15, %s3260_s30 }
   0xd   : > { %p324_p1 = scmp.eq.s32.totalorder %s323_s21, 0  ;;  %p337_p2 = scmp.eq.s32.totalorder %s3373_s17, 1 }
   0xe   : > { %p342_p3 = scmp.ne.s32.totalorder %s3260_s30, %s3256_s29  ;;  %p343_p4 = scmp.eq.s32.totalorder %s2649_s18, 1 }
   0xf   : > { %s3388_s22 = scalar_select %p324_p1, %s3264_s15, %s326_s20  }
  0x10   : > { %p3390_p5 = por %p337_p2, %p336_p0  ;;  %p3394_p6 = por %p343_p4, %p342_p3 }
  0x11   : > { %3884 = sst [smem:[#allocation10_spill]] %s3388_s22  ;;  %p2652_p7 = scmp.ge.s32.totalorder %s3268_s16, 1 }
  0x12   : > { %p437_p8 = scmp.lt.s32.totalorder %s3268_s16, 3 }
  0x14   : > { %p438_p9 = pnand %p2652_p7, %p437_p8 }
  0x15   : > { %v595_v0 = vld [vmem:[%s3866_s5] sm:$0xff] (!%p438_p9)  ;;  %v596_v1 = vld [vmem:[%s3866_s5 + $0x8] sm:$0xff] (!%p438_p9)  ;;  %v3270_v3 = vmov (!%p438_p9), 0.0|0.0   ;;  %v597_v6 = vld [vmem:[%s3866_s5 + $0x10] sm:$0xff] (!%p438_p9)  ;;  %p494_p10 = scmp.lt.s32.totalorder (!%p438_p9), %s3373_s17, 1  ;;  %vm3271_vm0 = vmmov (!%p438_p9), 0   ;;  %v761_v30 = vlaneseq (!%p438_p9) }
  0x16   : > { %441 = sbr.rel (%p438_p9) target bundleno = 4216 (0x1078), region = 72  ;;  %v510_v2 = vld [vmem:[%s3864_s3] sm:$0xff] (!%p438_p9)  ;;  %3041 = vmatprep.subr.bf16.mxu1 (!%p438_p9), %v3270_v3  ;;  %v3042_v4 = vpack.c.bf16 (!%p438_p9), %v596_v1, %v595_v0  ;;  %3035 = vmatprep.subr.bf16.mxu0 (!%p438_p9), %v3270_v3  ;;  %v511_v5 = vld [vmem:[%s3864_s3 + $0x8] sm:$0xff] (!%p438_p9)  ;;  %v598_v7 = vld [vmem:[%s3866_s5 + $0x18] sm:$0xff] (!%p438_p9)  ;;  %v3272_v11 = vmov (!%p438_p9), 0.0   ;;  %s3887_s1 = sld [smem:[#allocation12_spill]] (!%p438_p9) }
  0x17   : > { %v3036_v8 = vpack.c.bf16 (!%p438_p9), %v511_v5, %v510_v2  ;;  %v512_v9 = vld [vmem:[%s3864_s3 + $0x10] sm:$0xff] (!%p438_p9)  ;;  %v513_v10 = vld [vmem:[%s3864_s3 + $0x18] sm:$0xff] (!%p438_p9)  ;;  %2862 = vmatprep.mubr.msk.f32.mxu1 (!%p438_p9), %vm3271_vm0, %v3272_v11  ;;  %2851 = vmatprep.mubr.msk.f32.mxu0 (!%p438_p9), %vm3271_vm0, %v3272_v11  ;;  %v3045_v12 = vpack.c.bf16 (!%p438_p9), %v598_v7, %v597_v6  ;;  %s3888_s0 = sld [smem:[#allocation11_spill]] (!%p438_p9)  ;;  %vm521_vm1 = vcmask (!%p438_p9), 261120   ;;  %v2659_v16 = vld [vmem:[%s3867_s6] ss:$0 sm:$0xff] (!%p438_p9) }
  0x18   : > { %3043 = vmatpush3.bf16.msra.mxu1 (!%p438_p9), %v3042_v4  ;;  %v3039_v13 = vpack.c.bf16 (!%p438_p9), %v513_v10, %v512_v9  ;;  %v2657_v17 = vld [vmem:[%s3865_s4] ss:$0 sm:$0xff] (!%p438_p9)  ;;  %vm766_vm2 = vcmask (!%p438_p9), 64512   ;;  %v680_v25 = vld [vmem:[%s3868_s7 + $0x8] sm:$0xff] (!%p438_p9)  ;;  %v681_v26 = vld [vmem:[%s3868_s7 + $0x10] sm:$0xff] (!%p438_p9)  ;;  %s3889_s2 = sld [smem:[#allocation13_spill]] (!%p438_p9) }
  0x19   : > { %3037 = vmatpush3.bf16.msra.mxu0 (!%p438_p9), %v3036_v8  ;;  %3044 = vmatprep.subr.bf16.mxu1 (!%p438_p9), %v3270_v3  ;;  %v679_v24 = vld [vmem:[%s3868_s7] sm:$0xff] (!%p438_p9)  ;;  %v682_v28 = vld [vmem:[%s3868_s7 + $0x18] sm:$0xff] (!%p438_p9)  ;;  %v762_v32 = vshrl.u32 (!%p438_p9), %v761_v30, 7  ;;  %v2667_v50 = vld [vmem:[%s3864_s3 + $0x28] sm:$0xff] (!%p438_p9)  ;;  %s2758_s19 = sshll.u32 (!%p438_p9), %s3373_s17, 9 }
  0x1a   : > { %3038 = vmatprep.subr.bf16.mxu0 (!%p438_p9), %v3270_v3  ;;  %v3048_v27 = vpack.c.bf16 (!%p438_p9), %v680_v25, %v679_v24  ;;  %v3051_v29 = vpack.c.bf16 (!%p438_p9), %v682_v28, %v681_v26  ;;  %v2661_v46 = vld [vmem:[%s3869_s8] ss:$0 sm:$0xff] (!%p438_p9)  ;;  %v2668_v52 = vld [vmem:[%s3864_s3 + $0x30] sm:$0xff] (!%p438_p9)  ;;  %v2669_v53 = vld [vmem:[%s3864_s3 + $0x38] sm:$0xff] (!%p438_p9)  ;;  %s3780_s27 = scalar_lea.hbm (!%p438_p9), %s3875_s14, %s2758_s19 }
  0x1b   : > { %v763_v33 = vsub.s32 (!%p438_p9), 0, %v762_v32  ;;  %v2666_v49 = vld [vmem:[%s3864_s3 + $0x20] sm:$0xff] (!%p438_p9)  ;;  %v3057_v54 = vpack.c.bf16 (!%p438_p9), %v2669_v53, %v2668_v52  ;;  %v2674_v57 = vld [vmem:[%s3866_s5 + $0x28] sm:$0xff] (!%p438_p9)  ;;  %v2675_v61 = vld [vmem:[%s3866_s5 + $0x30] sm:$0xff] (!%p438_p9) }
  0x1c   : > { %3046 = vmatpush3.bf16.msra.mxu1 (!%p438_p9), %v3045_v12  ;;  %v3054_v51 = vpack.c.bf16 (!%p438_p9), %v2667_v50, %v2666_v49  ;;  %v2673_v56 = vld [vmem:[%s3866_s5 + $0x20] sm:$0xff] (!%p438_p9)  ;;  %v2676_v62 = vld [vmem:[%s3866_s5 + $0x38] sm:$0xff] (!%p438_p9) }
  0x1d   : > { %s3432_s22 = scalar_select %p494_p10, %s3373_s17, 1  ;;  %3040 = vmatpush3.bf16.msra.mxu0 %v3039_v13  ;;  %2876 = vmatprep.subr.mxu1 %v3272_v11  ;;  %v3060_v59 = vpack.c.bf16 %v2674_v57, %v2673_v56  ;;  %v3063_v63 = vpack.c.bf16 %v2676_v62, %v2675_v61  ;;  %v2678_v5 = vld [vmem:[%s3867_s6 + $0x1] ss:$0 sm:$0xff]  ;;  %v2681_v13 = vld [vmem:[%s3868_s7 + $0x28] sm:$0xff]  ;;  %v2697_v49 = vld [vmem:[%s3864_s3 + $0x58] sm:$0xff] }
  0x1e   : > { %3047 = vmatprep.subr.bf16.mxu0 %v3270_v3  ;;  %v2671_v6 = vld [vmem:[%s3865_s4 + $0x1] ss:$0 sm:$0xff]  ;;  %v2699_v62 = vld [vmem:[%s3865_s4 + $0x2] ss:$0 sm:$0xff] }
  0x1f   : > { %s2655_s15 = sshll.u32 %s3432_s22, 3  ;;  %v2680_v12 = vld [vmem:[%s3868_s7 + $0x20] sm:$0xff] }
  0x20   : > { %s501_s25 = scalar_lea.vmem %s3887_s1, %s2655_s15  ;;  %s497_s28 = scalar_lea.vmem %s3888_s0, %s2655_s15  ;;  %v2685_v30 = vld [vmem:[%s3869_s8 + $0x1] ss:$0 sm:$0xff] }
  0x21   : > { %v3443_v14 = vld [vmem:[%s501_s25] sm:$0xff]  ;;  %s504_s25 = scalar_lea.vmem %s3889_s2, %s3432_s22  ;;  %s3519_s22 = sand.u32 1, %s3260_s30  }
  0x22   : > { %v3445_v15 = vld [vmem:[%s497_s28] sm:$0xff]  ;;  %2863 = vmatmul.mubr.msk.f32.vlgmr.msra.gmra.mrb[0].mxu1 %vm521_vm1, %v3443_v14  ;;  %s2654_s20 = sshll.u32 %s3519_s22, 5 }
  0x23   : > { %2852 = vmatmul.mubr.msk.f32.vlgmr.msra.gmra.mrb[0].mxu0 %vm521_vm1, %v3445_v15  ;;  %2878 = vmatprep.mubr.msk.f32.mxu1 %vm3271_vm0, %v3272_v11  ;;  %v507_v31 = vld [vmem:[%s504_s25] sm:$0x1]  ;;  %s3535_s26 = scalar_lea.vmem [#allocation4], %s2654_s20  ;;  %s3273_s20 = smov [#allocation4]  }
  0x24   : > { %2873 = vmatprep.mubr.msk.f32.mxu0 %vm3271_vm0, %v3272_v11  ;;  %3049 = vmatpush3.bf16.msra.mxu0 %v3048_v27  ;;  %vm508_vm3 = vcmp.eq.s32.totalorder %v507_v31, 0  ;;  %s2534_s15 = sshll.u32 %s3535_s26, 4  ;;  %s3178_s0 = sshll.u32 %s3273_s20, 4  ;;  %s3775_s15 = int_to_ptr.vmem [resolvable:$true] %s2534_s15  ;;  %s3179_s0 = int_to_ptr.vmem [resolvable:$false] %s3178_s0 }
  0x25   : > { %3050 = vmatprep.subr.bf16.mxu0 %v3270_v3  ;;  %v509_v34 = vsel %vm508_vm3, -3.4028235e+38, %v3272_v11  ;;  %s3174_s18 = scalar_lea.vmem %s3775_s15, 512  ;;  %p3181_p0 = scmp.lt.s32.totalorder %s3775_s15, %s3179_s0 }
  0x26   : > { %v3491_v35 = vrot.slane %v509_v34, %v763_v33  ;;  %v2691_v33 = vld [vmem:[%s3870_s9 + $0x8] sm:$0xff]  ;;  %p3175_p11 = scmp.ne.s32.totalorder %s3775_s15, %s3174_s18 }
  0x28   : > { %3052 = vmatpush3.bf16.msra.mxu0 %v3051_v29  ;;  %p3176_p12 = pnand %p3175_p11, %p3390_p5 }
  0x29   : > { %3053 = vmatprep.subr.bf16.mxu0 %v3270_v3 }
  0x2a   : > { %p3177_p13 = pneg %p3176_p12 }
  0x2b   : > { %2874 = vmatmul.mubr.msk.f32.vlgmr.msra.gmra.mrb[2].mxu0 %vm521_vm1, %v3443_v14 }
  0x2c   : > { %2894 = vmatprep.mubr.msk.f32.mxu0 %vm3271_vm0, %v3272_v11  ;;  %3055 = vmatpush3.bf16.msra.mxu0 %v3054_v51 }
  0x2d   : > { %3056 = vmatprep.subr.bf16.mxu0 %v3270_v3 }
  0x30   : > { %3058 = vmatpush3.bf16.msra.mxu0 %v3057_v54 }
  0x31   : > { %3065 = vmatprep.subr.bf16.mxu0 %v3270_v3 }
  0x33   : > { %2895 = vmatmul.mubr.msk.f32.vlgmr.msra.gmra.mrb[4].mxu0 %vm521_vm1, %v3445_v15 }
  0x34   : > { %2916 = vmatprep.mubr.msk.f32.mxu0 %vm3271_vm0, %v3272_v11 }
  0xf5   : > { %v675_v18 = vpop.f32.mrb[0].mxu1 }
  0xf6   : > { %v676_v19 = vadd.f32 %v2659_v16, %v675_v18  ;;  %v2864_v20 = vpop.f32.mrb[1].mxu1  ;;  %v591_v21 = vpop.f32.mrb[0].mxu0  ;;  %v2682_v16 = vld [vmem:[%s3868_s7 + $0x30] sm:$0xff]  ;;  %v2683_v18 = vld [vmem:[%s3868_s7 + $0x38] sm:$0xff] }
  0xf7   : > { %v592_v22 = vadd.f32 %v2657_v17, %v591_v21  ;;  %v2853_v23 = vpop.f32.mrb[1].mxu0  ;;  %v3066_v17 = vpack.c.bf16 %v2681_v13, %v2680_v12 }
  0xf8   : > { %2877 = vmatpush3.xpose.msk.msra.mxu1 %vm766_vm2, %v676_v19  ;;  %v3069_v19 = vpack.c.bf16 %v2683_v18, %v2682_v16 }
  0xf9   : > { %2881 = vmatprep.subr.mxu1 %v3272_v11  ;;  %3067 = vmatpush3.bf16.msra.mxu0 %v3066_v17 }
  0xfa   : > { %3068 = vmatprep.subr.bf16.mxu0 %v3270_v3 }
  0xfb   : > { %2879 = vmatmul.mubr.msk.f32.vlgmr.msra.gmra.mrb[2].mxu1 %vm766_vm2, %v592_v22 }
  0xfc   : > { %2883 = vmatprep.mubr.msk.f32.mxu1 %vm3271_vm0, %v3272_v11 }
  0xfd   : > { %3070 = vmatpush3.bf16.msra.mxu0 %v3069_v19 }
  0xfe   : > { %v756_v45 = vpop.f32.mrb[2].mxu0  ;;  %2929 = vmatprep.subr.mxu0 %v3272_v11 }
  0xff   : > { %v2875_v47 = vpop.f32.mrb[3].mxu0  ;;  %v757_v48 = vadd.f32 %v2661_v46, %v756_v45  ;;  %v2694_v45 = vld [vmem:[%s3864_s3 + $0x40] sm:$0xff]  ;;  %v2695_v46 = vld [vmem:[%s3864_s3 + $0x48] sm:$0xff] }
 0x100   : > { %2917 = vmatmul.mubr.msk.f32.vlgmr.msra.gmra.mrb[6].mxu0 %vm521_vm1, %v3443_v14  ;;  %v3072_v47 = vpack.c.bf16 %v2695_v46, %v2694_v45 }
 0x101   : > { %2882 = vmatpush3.msra.mxu1 %v757_v48  ;;  %2931 = vmatprep.mubr.msk.f32.mxu0 %vm3271_vm0, %v3272_v11  ;;  %v2696_v48 = vld [vmem:[%s3864_s3 + $0x50] sm:$0xff] }
 0x102   : > { %3059 = vmatprep.subr.bf16.mxu1 %v3270_v3  ;;  %2930 = vmatpush3.msra.mxu0 %v2691_v33  ;;  %v3075_v52 = vpack.c.bf16 %v2697_v49, %v2696_v48  ;;  %v2724_v33 = vld [vmem:[%s3864_s3 + $0x78] sm:$0xff]  ;;  %v2733_v49 = vld [vmem:[%s3867_s6 + $0x3] ss:$0 sm:$0xff] }
 0x103   : > { %3071 = vmatprep.subr.bf16.mxu0 %v3270_v3 }
 0x106   : > { %v1008_v0 = vpop.f32.mrb[4].mxu0 }
 0x107   : > { %v2896_v1 = vpop.f32.mrb[5].mxu0  ;;  %v1009_v10 = vadd.f32 %v2671_v6, %v1008_v0 }
 0x1ce   : > { %v839_v36 = vpop.f32.mrb[2].mxu1 }
 0x1cf   : > { %v840_v37 = vadd.f32 %v839_v36, %v3491_v35  ;;  %v2880_v38 = vpop.f32.mrb[3].mxu1 }
 0x1d0   : > { %v928_v38 = vld [vmem:[%s3870_s9] sm:$0xff] }
 0x1d1   : > { %v843_v39 = vsel %vm766_vm2, %v840_v37, -inf }
 0x1d2   : > { %844 = vmax.xlane.f32.xlu0 %v843_v39  ;;  %v2701_v39 = vld [vmem:[%s3866_s5 + $0x40] sm:$0xff] }
 0x1d3   : > { %v1174_v29 = vpop.f32.mrb[6].mxu0 }
 0x1d4   : > { %v2918_v31 = vpop.f32.mrb[7].mxu0  ;;  %v1175_v32 = vadd.f32 %v2685_v30, %v1174_v29  ;;  %v2721_v29 = vld [vmem:[%s3864_s3 + $0x60] sm:$0xff]  ;;  %v2722_v30 = vld [vmem:[%s3864_s3 + $0x68] sm:$0xff] }
 0x1d5   : > { %v3090_v31 = vpack.c.bf16 %v2722_v30, %v2721_v29 }
 0x25f   : > { %v845_v40 = vpop.xlane.xlu0 %844 }
 0x260   : > { %v846_v41 = vsub.f32 %v840_v37, %v845_v40  ;;  %v2702_v40 = vld [vmem:[%s3866_s5 + $0x48] sm:$0xff] }
 0x262   : > { %v847_v42 = vmul.f32 1.442695, %v846_v41  ;;  %v3078_v41 = vpack.c.bf16 %v2702_v40, %v2701_v39  ;;  %v2730_v39 = vld [vmem:[%s3866_s5 + $0x70] sm:$0xff]  ;;  %v2731_v40 = vld [vmem:[%s3866_s5 + $0x78] sm:$0xff] }
 0x264   : > { %3156 = vpow2.f32 %v847_v42  ;;  %v2703_v42 = vld [vmem:[%s3866_s5 + $0x50] sm:$0xff] }
 0x26e   : > { %v3157_v43 = vpop.eup %3156 }
 0x26f   : > { %v849_v44 = vsel %vm766_vm2, %v3157_v43, 0.0 }
 0x270   : > { %850 = vadd.xlane.f32.xlu0 %v849_v44 }
 0x2fd   : > { %v851_v55 = vpop.xlane.xlu0 %850 }
 0x2fe   : > { %3158 = vrcp.f32 %v851_v55  ;;  %v2706_v55 = vld [vmem:[%s3867_s6 + $0x2] ss:$0 sm:$0xff] }
 0x308   : > { %v3159_v58 = vpop.eup %3158 }
 0x309   : > { %v853_v60 = vmul.f32 %v3159_v58, %v3157_v43  ;;  %v2704_v43 = vld [vmem:[%s3866_s5 + $0x58] sm:$0xff] }
 0x30a   : > { %v3081_v44 = vpack.c.bf16 %v2704_v43, %v2703_v42  ;;  %v3099_v43 = vpack.c.bf16 %v2731_v40, %v2730_v39 }
 0x30b   : > { %2884 = vmatmul.mubr.msk.f32.vlgmr.msra.gmra.mrb[4].mxu1 %vm766_vm2, %v853_v60  ;;  %854 = vst.msk [vmem:[%s3535_s26] sm:$0xff] %vm766_vm2, %v853_v60 }
 0x30c   : > { %3061 = vmatpush3.bf16.msra.mxu1 %v3060_v59  ;;  %2905 = vmatprep.mubr.msk.f32.mxu1 %vm3271_vm0, %v3272_v11 }
 0x30d   : > { %3062 = vmatprep.subr.bf16.mxu1 %v3270_v3 }
 0x310   : > { %3064 = vmatpush3.bf16.msra.mxu1 %v3063_v63 }
 0x311   : > { %2919 = vmatprep.subr.mxu1 %v3272_v11 }
 0x313   : > { %2906 = vmatmul.mubr.msk.f32.vlgmr.msra.gmra.mrb[6].mxu1 %vm521_vm1, %v3443_v14 }
 0x314   : > { %2921 = vmatprep.mubr.msk.f32.mxu1 %vm3271_vm0, %v3272_v11 }
 0x3de   : > { %v924_v2 = vpop.f32.mrb[4].mxu1 }
 0x3df   : > { %v2885_v4 = vpop.f32.mrb[5].mxu1 }
 0x3e0   : > { %v2709_v4 = vld [vmem:[%s3868_s7 + $0x48] sm:$0xff] }
 0x3e6   : > { %v1091_v7 = vpop.f32.mrb[6].mxu1 }
 0x3e7   : > { %v1092_v8 = vadd.f32 %v2678_v5, %v1091_v7  ;;  %v2907_v9 = vpop.f32.mrb[7].mxu1  ;;  %v2710_v5 = vld [vmem:[%s3868_s7 + $0x50] sm:$0xff]  ;;  %v2711_v7 = vld [vmem:[%s3868_s7 + $0x58] sm:$0xff] }
 0x3e9   : > { %2920 = vmatpush3.xpose.msk.msra.mxu1 %vm766_vm2, %v1092_v8  ;;  %v3087_v8 = vpack.c.bf16 %v2711_v7, %v2710_v5  ;;  %v2746_v7 = vld [vmem:[%s3870_s9 + $0x18] sm:$0xff] }
 0x3ea   : > { %2924 = vmatprep.subr.mxu1 %v3272_v11 }
 0x3ec   : > { %2922 = vmatmul.mubr.msk.f32.vlgmr.msra.gmra.mrb[8].mxu1 %vm766_vm2, %v1009_v10 }
 0x3ed   : > { %2926 = vmatprep.mubr.msk.f32.mxu1 %vm3271_vm0, %v3272_v11  ;;  %2925 = vmatpush3.msra.mxu1 %v1175_v32  ;;  %v2723_v32 = vld [vmem:[%s3864_s3 + $0x70] sm:$0xff] }
 0x3ee   : > { %2934 = vmatprep.subr.mxu1 %v3272_v11 }
 0x4bf   : > { %v1250_v20 = vpop.f32.mrb[8].mxu1 }
 0x4c0   : > { %v1251_v21 = vadd.f32 %v1250_v20, %v3491_v35  ;;  %v2923_v22 = vpop.f32.mrb[9].mxu1 }
 0x4c1   : > { %v2713_v22 = vld [vmem:[%s3869_s8 + $0x2] ss:$0 sm:$0xff] }
 0x4c2   : > { %v1254_v23 = vsel %vm766_vm2, %v1251_v21, -inf }
 0x4c3   : > { %1255 = vmax.xlane.f32.xlu1 %v1254_v23 }
 0x550   : > { %v1256_v24 = vpop.xlane.xlu1 %1255 }
 0x551   : > { %v1257_v25 = vsub.f32 %v1251_v21, %v1256_v24 }
 0x553   : > { %v1258_v26 = vmul.f32 1.442695, %v1257_v25  ;;  %v2719_v25 = vld [vmem:[%s3870_s9 + $0x10] sm:$0xff] }
 0x555   : > { %3160 = vpow2.f32 %v1258_v26 }
 0x55f   : > { %v3161_v27 = vpop.eup %3160 }
 0x560   : > { %v1260_v28 = vsel %vm766_vm2, %v3161_v27, 0.0 }
 0x561   : > { %1261 = vadd.xlane.f32.xlu1 %v1260_v28 }
 0x5ee   : > { %v1262_v34 = vpop.xlane.xlu1 %1261 }
 0x5ef   : > { %3162 = vrcp.f32 %v1262_v34  ;;  %v3093_v34 = vpack.c.bf16 %v2724_v33, %v2723_v32 }
 0x5f9   : > { %v3163_v36 = vpop.eup %3162 }
 0x5fa   : > { %v1264_v37 = vmul.f32 %v3163_v36, %v3161_v27  ;;  %v2728_v36 = vld [vmem:[%s3866_s5 + $0x60] sm:$0xff] }
 0x5fc   : > { %2927 = vmatmul.mubr.msk.f32.vlgmr.msra.gmra.mrb[10].mxu1 %vm766_vm2, %v1264_v37  ;;  %2689 = vst.msk [vmem:[%s3535_s26 + $0x8] sm:$0xff] %vm766_vm2, %v1264_v37  ;;  %v2729_v37 = vld [vmem:[%s3866_s5 + $0x68] sm:$0xff] }
 0x5fd   : > { %2935 = vmatpush3.msra.mxu1 %v928_v38  ;;  %2936 = vmatprep.mubr.msk.f32.mxu1 %vm3271_vm0, %v3272_v11  ;;  %v3096_v38 = vpack.c.bf16 %v2729_v37, %v2728_v36 }
 0x5fe   : > { %3077 = vmatprep.subr.bf16.mxu1 %v3270_v3 }
 0x600   : > { %2937 = vmatmul.mubr.msk.f32.vlgmr.msra.gmra.mrb[12].mxu1 %vm766_vm2, %v924_v2  ;;  %v2708_v2 = vld [vmem:[%s3868_s7 + $0x40] sm:$0xff] }
 0x601   : > { %3079 = vmatpush3.bf16.msra.mxu1 %v3078_v41  ;;  %2958 = vmatprep.mubr.msk.f32.mxu1 %vm3271_vm0, %v3272_v11  ;;  %v3084_v6 = vpack.c.bf16 %v2709_v4, %v2708_v2 }
 0x602   : > { %3080 = vmatprep.subr.bf16.mxu1 %v3270_v3 }
 0x605   : > { %3082 = vmatpush3.bf16.msra.mxu1 %v3081_v44 }
 0x606   : > { %2972 = vmatprep.subr.mxu1 %v3272_v11 }
 0x608   : > { %2959 = vmatmul.mubr.msk.f32.vlgmr.msra.gmra.mrb[14].mxu1 %vm521_vm1, %v3443_v14 }
 0x609   : > { %2974 = vmatprep.mubr.msk.f32.mxu1 %vm3271_vm0, %v3272_v11 }
 0x6cf   : > { %v1336_v50 = vpop.f32.mrb[10].mxu1 }
 0x6d0   : > { %v2928_v51 = vpop.f32.mrb[11].mxu1  ;;  %2932 = vmatmul.mubr.msk.f32.vlgmr.msra.gmra.mrb[8].mxu0 %vm766_vm2, %v1336_v50  ;;  %v2726_v50 = vld [vmem:[%s3865_s4 + $0x3] ss:$0 sm:$0xff] }
 0x6d1   : > { %3073 = vmatpush3.bf16.msra.mxu0 %v3072_v47  ;;  %2947 = vmatprep.mubr.msk.f32.mxu0 %vm3271_vm0, %v3272_v11 }
 0x6d2   : > { %3074 = vmatprep.subr.bf16.mxu0 %v3270_v3 }
 0x6d3   : > { %v1484_v53 = vpop.f32.mrb[12].mxu1 }
 0x6d4   : > { %v2938_v54 = vpop.f32.mrb[13].mxu1 }
 0x6d5   : > { %3076 = vmatpush3.bf16.msra.mxu0 %v3075_v52 }
 0x6d6   : > { %3083 = vmatprep.subr.bf16.mxu0 %v3270_v3 }
 0x6d8   : > { %2948 = vmatmul.mubr.msk.f32.vlgmr.msra.gmra.mrb[10].mxu0 %vm521_vm1, %v3445_v15 }
 0x6d9   : > { %2969 = vmatprep.mubr.msk.f32.mxu0 %vm3271_vm0, %v3272_v11  ;;  %3085 = vmatpush3.bf16.msra.mxu0 %v3084_v6 }
 0x6da   : > { %3086 = vmatprep.subr.bf16.mxu0 %v3270_v3 }
 0x6db   : > { %v1650_v56 = vpop.f32.mrb[14].mxu1 }
 0x6dc   : > { %v1651_v57 = vadd.f32 %v2706_v55, %v1650_v56  ;;  %v2960_v58 = vpop.f32.mrb[15].mxu1  ;;  %v2735_v55 = vld [vmem:[%s3868_s7 + $0x60] sm:$0xff]  ;;  %v2736_v56 = vld [vmem:[%s3868_s7 + $0x68] sm:$0xff] }
 0x6dd   : > { %3088 = vmatpush3.bf16.msra.mxu0 %v3087_v8  ;;  %v3102_v58 = vpack.c.bf16 %v2736_v56, %v2735_v55 }
 0x6de   : > { %2973 = vmatpush3.xpose.msk.msra.mxu1 %vm766_vm2, %v1651_v57  ;;  %2982 = vmatprep.subr.mxu0 %v3272_v11  ;;  %v2737_v57 = vld [vmem:[%s3868_s7 + $0x70] sm:$0xff] }
 0x6df   : > { %2977 = vmatprep.subr.mxu1 %v3272_v11 }
 0x6e0   : > { %2970 = vmatmul.mubr.msk.f32.vlgmr.msra.gmra.mrb[12].mxu0 %vm521_vm1, %v3443_v14 }
 0x6e1   : > { %2984 = vmatprep.mubr.msk.f32.mxu0 %vm3271_vm0, %v3272_v11  ;;  %2983 = vmatpush3.msra.mxu0 %v2719_v25 }
 0x6e2   : > { %3095 = vmatprep.subr.bf16.mxu0 %v3270_v3 }
 0x7a3   : > { %v1411_v59 = vpop.f32.mrb[8].mxu0 }
 0x7a4   : > { %v3643_v60 = vadd.f32 %v1484_v53, %v1411_v59  ;;  %v2933_v61 = vpop.f32.mrb[9].mxu0  ;;  %v2738_v59 = vld [vmem:[%s3868_s7 + $0x78] sm:$0xff] }
 0x7ab   : > { %v1567_v63 = vpop.f32.mrb[10].mxu0 }
 0x7ac   : > { %v1568_v0 = vadd.f32 %v2699_v62, %v1567_v63  ;;  %v2949_v1 = vpop.f32.mrb[11].mxu0 }
 0x7ae   : > { %2975 = vmatmul.mubr.msk.f32.vlgmr.msra.gmra.mrb[16].mxu1 %vm766_vm2, %v1568_v0 }
 0x7af   : > { %2979 = vmatprep.mubr.msk.f32.mxu1 %vm3271_vm0, %v3272_v11 }
 0x7b3   : > { %v1733_v21 = vpop.f32.mrb[12].mxu0 }
 0x7b4   : > { %v2971_v23 = vpop.f32.mrb[13].mxu0  ;;  %v1734_v24 = vadd.f32 %v2713_v22, %v1733_v21 }
 0x7b6   : > { %2978 = vmatpush3.msra.mxu1 %v1734_v24 }
 0x7b7   : > { %3089 = vmatprep.subr.bf16.mxu1 %v3270_v3 }
 0x881   : > { %v1809_v9 = vpop.f32.mrb[16].mxu1 }
 0x882   : > { %v1810_v10 = vadd.f32 %v1809_v9, %v3491_v35  ;;  %v2976_v12 = vpop.f32.mrb[17].mxu1 }
 0x884   : > { %v1813_v13 = vsel %vm766_vm2, %v1810_v10, -inf }
 0x885   : > { %1814 = vmax.xlane.f32.xlu0 %v1813_v13 }
 0x912   : > { %v1815_v16 = vpop.xlane.xlu0 %1814 }
 0x913   : > { %v1816_v17 = vsub.f32 %v1810_v10, %v1815_v16 }
 0x915   : > { %v1817_v18 = vmul.f32 1.442695, %v1816_v17  ;;  %v2748_v17 = vld [vmem:[%s3871_s10] ss:$0 sm:$0xff] }
 0x917   : > { %3164 = vpow2.f32 %v1817_v18 }
 0x921   : > { %v3165_v19 = vpop.eup %3164 }
 0x922   : > { %v1819_v20 = vsel %vm766_vm2, %v3165_v19, 0.0 }
 0x923   : > { %1820 = vadd.xlane.f32.xlu1 %v1819_v20 }
 0x9b0   : > { %v1821_v26 = vpop.xlane.xlu1 %1820 }
 0x9b1   : > { %3166 = vrcp.f32 %v1821_v26 }
 0x9bb   : > { %v3167_v27 = vpop.eup %3166 }
 0x9bc   : > { %v1823_v28 = vmul.f32 %v3167_v27, %v3165_v19 }
 0x9be   : > { %2980 = vmatmul.mubr.msk.f32.vlgmr.msra.gmra.mrb[18].mxu1 %vm766_vm2, %v1823_v28  ;;  %2717 = vst.msk [vmem:[%s3535_s26 + $0x10] sm:$0xff] %vm766_vm2, %v1823_v28 }
 0x9bf   : > { %2995 = vmatprep.mubr.msk.f32.mxu1 %vm3271_vm0, %v3272_v11  ;;  %3091 = vmatpush3.bf16.msra.mxu1 %v3090_v31 }
 0x9c0   : > { %3092 = vmatprep.subr.bf16.mxu1 %v3270_v3 }
 0x9c3   : > { %3094 = vmatpush3.bf16.msra.mxu1 %v3093_v34 }
 0x9c4   : > { %3101 = vmatprep.subr.bf16.mxu1 %v3270_v3 }
 0x9c6   : > { %2996 = vmatmul.mubr.msk.f32.vlgmr.msra.gmra.mrb[20].mxu1 %vm521_vm1, %v3445_v15 }
 0x9c7   : > { %3017 = vmatprep.mubr.msk.f32.mxu1 %vm3271_vm0, %v3272_v11  ;;  %3103 = vmatpush3.bf16.msra.mxu1 %v3102_v58 }
 0x9c8   : > { %3104 = vmatprep.subr.bf16.mxu1 %v3270_v3 }
 0xa91   : > { %v1895_v41 = vpop.f32.mrb[18].mxu1 }
 0xa92   : > { %v2981_v42 = vpop.f32.mrb[19].mxu1  ;;  %2985 = vmatmul.mubr.msk.f32.vlgmr.msra.gmra.mrb[14].mxu0 %vm766_vm2, %v1895_v41 }
 0xa93   : > { %3097 = vmatpush3.bf16.msra.mxu0 %v3096_v38  ;;  %3006 = vmatprep.mubr.msk.f32.mxu0 %vm3271_vm0, %v3272_v11 }
 0xa94   : > { %3098 = vmatprep.subr.bf16.mxu0 %v3270_v3 }
 0xa97   : > { %3100 = vmatpush3.bf16.msra.mxu0 %v3099_v43 }
 0xa98   : > { %3020 = vmatprep.subr.mxu0 %v3272_v11 }
 0xa99   : > { %v2054_v44 = vpop.f32.mrb[20].mxu1 }
 0xa9a   : > { %3007 = vmatmul.mubr.msk.f32.vlgmr.msra.gmra.mrb[16].mxu0 %vm521_vm1, %v3443_v14  ;;  %v2997_v45 = vpop.f32.mrb[21].mxu1  ;;  %v2055_v54 = vadd.f32 %v2726_v50, %v2054_v44 }
 0xa9b   : > { %3022 = vmatprep.mubr.msk.f32.mxu0 %vm3271_vm0, %v3272_v11 }
 0xb65   : > { %v1970_v46 = vpop.f32.mrb[14].mxu0 }
 0xb66   : > { %v1974_v47 = vadd.f32 %v1970_v46, %v3643_v60  ;;  %v2986_v48 = vpop.f32.mrb[15].mxu0  ;;  %v3105_v60 = vpack.c.bf16 %v2738_v59, %v2737_v57 }
 0xb68   : > { %3106 = vmatpush3.bf16.msra.mxu1 %v3105_v60 }
 0xb69   : > { %3030 = vmatprep.subr.mxu1 %v3272_v11 }
 0xb6b   : > { %3018 = vmatmul.mubr.msk.f32.vlgmr.msra.gmra.mrb[22].mxu1 %vm521_vm1, %v3443_v14 }
 0xb6c   : > { %3032 = vmatprep.mubr.msk.f32.mxu1 %vm3271_vm0, %v3272_v11  ;;  %3031 = vmatpush3.msra.mxu1 %v2746_v7 }
 0xb6d   : > { %v2137_v51 = vpop.f32.mrb[16].mxu0 }
 0xb6e   : > { %v2138_v52 = vadd.f32 %v2733_v49, %v2137_v51  ;;  %v3008_v53 = vpop.f32.mrb[17].mxu0 }
 0xb70   : > { %3021 = vmatpush3.xpose.msk.msra.mxu0 %vm766_vm2, %v2138_v52 }
 0xb71   : > { %3025 = vmatprep.subr.mxu0 %v3272_v11 }
 0xb73   : > { %3023 = vmatmul.mubr.msk.f32.vlgmr.msra.gmra.mrb[18].mxu0 %vm766_vm2, %v2055_v54 }
 0xb74   : > { %3027 = vmatprep.mubr.msk.f32.mxu0 %vm3271_vm0, %v3272_v11  ;;  %v2740_v11 = vld [vmem:[%s3869_s8 + $0x3] ss:$0 sm:$0xff] }
 0xc3e   : > { %v2220_v14 = vpop.f32.mrb[22].mxu1 }
 0xc3f   : > { %v3019_v6 = vpop.f32.mrb[23].mxu1 }
 0xc46   : > { %v2296_v61 = vpop.f32.mrb[18].mxu0 }
 0xc47   : > { %v2297_v62 = vadd.f32 %v2296_v61, %v3491_v35  ;;  %v3024_v63 = vpop.f32.mrb[19].mxu0  ;;  %v2221_v35 = vadd.f32 %v2740_v11, %v2220_v14 }
 0xc49   : > { %v2300_v0 = vsel %vm766_vm2, %v2297_v62, -inf  ;;  %3026 = vmatpush3.msra.mxu0 %v2221_v35 }
 0xc4a   : > { %2301 = vmax.xlane.f32.xlu0 %v2300_v0 }
 0xcd7   : > { %v2302_v1 = vpop.xlane.xlu0 %2301 }
 0xcd8   : > { %v2303_v2 = vsub.f32 %v2297_v62, %v2302_v1 }
 0xcda   : > { %v2304_v4 = vmul.f32 1.442695, %v2303_v2 }
 0xcdc   : > { %3168 = vpow2.f32 %v2304_v4 }
 0xce6   : > { %v3169_v3 = vpop.eup %3168 }
 0xce7   : > { %v2306_v5 = vsel %vm766_vm2, %v3169_v3, 0.0 }
 0xce8   : > { %2307 = vadd.xlane.f32.xlu1 %v2306_v5 }
 0xd75   : > { %v2308_v8 = vpop.xlane.xlu1 %2307 }
 0xd76   : > { %3170 = vrcp.f32 %v2308_v8 }
 0xd80   : > { %v3171_v9 = vpop.eup %3170 }
 0xd81   : > { %v2310_v10 = vmul.f32 %v3171_v9, %v3169_v3 }
 0xd83   : > { %3028 = vmatmul.mubr.msk.f32.vlgmr.msra.gmra.mrb[20].mxu0 %vm766_vm2, %v2310_v10  ;;  %2744 = vst.msk [vmem:[%s3535_s26 + $0x18] sm:$0xff] %vm766_vm2, %v2310_v10  ;;  %s3180_s26 = scalar_lea.vmem %s3179_s0, 1024 }
 0xd84   : > { %p3182_p1 = scmp.lt.s32.totalorder %s3180_s26, %s3174_s18 }
 0xd86   : > { %p3183_p2 = por %p3182_p1, %p3181_p0 }
 0xd88   : > { %p3184_p3 = pnand %p3183_p2, %p3177_p13 }
 0xe56   : > { %v2382_v12 = vpop.f32.mrb[20].mxu0 }
 0xe57   : > { %v3029_v13 = vpop.f32.mrb[21].mxu0  ;;  %3033 = vmatmul.mubr.msk.f32.vlgmr.msra.gmra.mrb[24].mxu1 %vm766_vm2, %v2382_v12 }
 0xf2a   : > { %v2457_v16 = vpop.f32.mrb[24].mxu1 }
 0xf2b   : > { %v2461_v18 = vadd.f32 %v2457_v16, %v1974_v47  ;;  %v3034_v19 = vpop.f32.mrb[25].mxu1 }
 0xf2d   : > { %v2469_v20 = vadd.f32 %v2748_v17, %v2461_v18 }
 0xf2f   : > { %v2470_v21 = vadd.f32 %v2469_v20, %v3445_v15 }
 0xf31   : > { %v2471_v22 = vsel %vm521_vm1, %v2470_v21, 0.0 }
 0xf32   : > { %2472 = vadd.xlane.f32.xlu0 %v2471_v22 }
 0xfbf   : > { %v2473_v23 = vpop.xlane.xlu0 %2472 }
 0xfc0   : > { %v2475_v24 = vmul.f32 0.03125, %v2473_v23 }
 0xfc2   : > { %v2476_v25 = vsub.f32 %v2470_v21, %v2475_v24 }
 0xfc4   : > { %v2477_v26 = vmul.f32 %v2476_v25, %v2476_v25 }
 0xfc6   : > { %v2478_v27 = vsel %vm521_vm1, %v2477_v26, 0.0 }
 0xfc7   : > { %2479 = vadd.xlane.f32.xlu1 %v2478_v27 }
 0xfc8   : > { %3187 = shalt.err (!%p3184_p3)
}
 0xfc9   : > { %s3188_s19 = scalar_lea.hbm %s3780_s27, 512  ;;  %s3192_s20 = scalar_lea.hbm %s3875_s14, 1024 }
 0xfca   : > { %p3189_p4 = scmp.ne.s32.totalorder %s3780_s27, %s3188_s19  ;;  %p3193_p9 = scmp.lt.u32.totalorder %s3780_s27, %s3875_s14 }
 0xfcb   : > { %p3194_p10 = scmp.lt.u32.totalorder %s3192_s20, %s3188_s19  ;;  %p3196_p12 = scmp.lt.u32.totalorder %s3188_s19, %s3780_s27 }
 0xfcc   : > { %p3190_p7 = pnand %p3189_p4, %p3390_p5 }
 0xfcd   : > { %p3195_p11 = por %p3194_p10, %p3193_p9 }
 0xfce   : > { %p3191_p8 = pneg %p3190_p7 }
 0xfcf   : > { %p3197_p13 = por %p3196_p12, %p3195_p11 }
 0xfd1   : > { %p3198_p0 = pnand %p3197_p13, %p3191_p8 }
 0xfd3   : > { %3201 = shalt.err (!%p3198_p0)
}
 0xfd4   : > { %s3274_s18 = smov 128   ;;  %s3275_s26 = smov 8   ;;  %v2749_v31 = vld [vmem:[%s3872_s11] ss:$0 sm:$0xff] }
 0xfd5   : > { %s3890_s21 = scalar_lea.sflag [#allocation5], %s3519_s22  ;;  %s2653_s28 = sshll.u32 %s3519_s22, 3  ;;  %v2750_v33 = vld [vmem:[%s3873_s12] ss:$0 sm:$0xff] }
 0xfd6   : > { %3108 = dma.vmem_to_hbm [thread:$0]  (%p3390_p5), %s3775_s15, 512, %s3780_s27, %s3890_s21, %s3274_s18, %s3274_s18, %s3275_s26  }
 0xfd7   : > { %s2753_s1 = sshll.u32 %s3373_s17, 7  ;;  %s486_s2 = scalar_lea.vmem [#allocation2], %s2653_s28 }
 0xfd8   : > { %s2521_s15 = sshll.u32 %s486_s2, 4  ;;  %s3817_s26 = scalar_lea.hbm %s3874_s13, %s2753_s1  ;;  %s3819_s15 = int_to_ptr.vmem [resolvable:$true] %s2521_s15 }
 0xfd9   : > { %s2503_s21 = scalar_lea.sflag [#allocation3], %s3519_s22  ;;  %s3202_s19 = scalar_lea.vmem %s3819_s15, 128 }
 0xfda   : > { %p3203_p1 = scmp.ne.s32.totalorder %s3819_s15, %s3202_s19  ;;  %s3276_s17 = smov [#allocation2]  }
 0xfdb   : > { %s3206_s28 = sshll.u32 %s3276_s17, 4  ;;  %s3207_s28 = int_to_ptr.vmem [resolvable:$false] %s3206_s28 }
 0xfdc   : > { %p3204_p2 = pnand %p3203_p1, %p3390_p5  ;;  %s3208_s25 = scalar_lea.vmem %s3207_s28, 256 }
 0xfdd   : > { %p3209_p4 = scmp.lt.s32.totalorder %s3819_s15, %s3207_s28  ;;  %p3210_p7 = scmp.lt.s32.totalorder %s3208_s25, %s3202_s19 }
 0xfde   : > { %p3205_p3 = pneg %p3204_p2 }
 0xfdf   : > { %p3211_p8 = por %p3210_p7, %p3209_p4 }
 0xfe1   : > { %p3212_p9 = pnand %p3211_p8, %p3205_p3 }
0x1054   : > { %v2480_v15 = vpop.xlane.xlu1 %2479 }
0x1055   : > { %v2481_v28 = vmul.f32 0.03125, %v2480_v15 }
0x1057   : > { %v2482_v29 = vadd.f32 1e-05, %v2481_v28 }
0x1059   : > { %3172 = vrsqrt.f32 %v2482_v29 }
0x1063   : > { %v3173_v30 = vpop.eup %3172 }
0x1064   : > { %v2484_v32 = vmul.f32 %v3173_v30, %v2476_v25 }
0x1066   : > { %v2492_v34 = vmul.f32 %v2749_v31, %v2484_v32 }
0x1068   : > { %v2500_v36 = vadd.f32 %v2750_v33, %v2492_v34 }
0x106a   : > { %2501 = vst.msk [vmem:[%s486_s2] sm:$0xff] %vm521_vm1, %v2500_v36 }
0x106b   : > { %3215 = shalt.err (!%p3212_p9)
}
0x106c   : > { %s3216_s1 = scalar_lea.hbm %s3817_s26, 128  ;;  %s3220_s20 = scalar_lea.hbm %s3874_s13, 256 }
0x106d   : > { %p3217_p10 = scmp.ne.s32.totalorder %s3817_s26, %s3216_s1  ;;  %p3221_p13 = scmp.lt.u32.totalorder %s3817_s26, %s3874_s13 }
0x106e   : > { %p3222_p0 = scmp.lt.u32.totalorder %s3220_s20, %s3216_s1  ;;  %p3224_p2 = scmp.lt.u32.totalorder %s3216_s1, %s3817_s26 }
0x106f   : > { %p3218_p11 = pnand %p3217_p10, %p3390_p5 }
0x1070   : > { %p3223_p1 = por %p3222_p0, %p3221_p13 }
0x1071   : > { %p3219_p12 = pneg %p3218_p11 }
0x1072   : > { %p3225_p3 = por %p3224_p2, %p3223_p1 }
0x1074   : > { %p3226_p4 = pnand %p3225_p3, %p3219_p12 }
0x1076   : > { %3229 = shalt.err (!%p3226_p4)
}
0x1077   : > { %3107 = dma.vmem_to_hbm [thread:$0]  (%p3390_p5), %s3819_s15, 128, %s3817_s26, %s2503_s21  }
0x1078 PF: > { %p3118_p7 = scmp.ge.s32.totalorder %s3268_s16, 2  ;;  %s2549_s18 = sand.u32 1, %s3256_s29  }
0x1079   : > { %s2550_s19 = scalar_lea.sflag [#allocation3], %s2549_s18 }
0x107a   : > { %p3112_p8 = pnand %p3118_p7, %p3394_p6 }
0x107c   : > { %3247 = dma.done.wait (!%p3112_p8), %s2550_s19, 128  }
0x107d   : > { %3249 = vsyncadd (!%p3112_p8), %s2550_s19, 4294967168  ;;  %s2559_s17 = scalar_lea.sflag [#allocation5], %s2549_s18 }
0x107e   : > { %3251 = dma.done.wait (!%p3112_p8), %s2559_s17, 512  }
0x107f   : > { %3253 = vsyncadd (!%p3112_p8), %s2559_s17, 4294966784  ;;  %s3891_s16 = sld [smem:[#allocation9_spill]]  ;;  %s3892_s23 = sld [smem:[#allocation8_spill]] }
0x1080   : > { %s3893_s15 = sld [smem:[#allocation10_spill]]  ;;  %s3894_s29 = smov %s3260_s30 }
0x1085   : > { %p28_p5 = scmp.ge.s32.totalorder %s3891_s16, 4   ;;  %s3895_s30 = smov %s3892_s23 }
0x1087   :  { %30 = sbr.rel (!%p28_p5) target bundleno = 9 (0x9), region = 154 }
0x108e   :  { %2564 = vsyncpa [#allocation3], 1 }
0x108f   :  { %2566 = vsyncpa [#allocation3 + $0x1], 1 }
0x1090   :  { %2567 = vsyncpa [#allocation5], 1 }
0x1091   :  { %2569 = vsyncpa [#allocation5 + $0x1], 1 }

</bundles_post_ra>
